<compile_context>
chip_gen: v7x
topology: tpu7x:2x2x1
jax: 0.10.0
libtpu: 0.0.40
codegen_flags: <defaults>
</compile_context>

<pallas_src>
import math
import functools

import jax
import jax.numpy as jnp
from jax.experimental import pallas as pl
from jax.experimental.pallas import tpu as pltpu

# Full-precision f32 matmuls everywhere so kernel vs. reference comparison is meaningful on TPU.
jax.config.update("jax_default_matmul_precision", "highest")
_HI = jax.lax.Precision.HIGHEST


# ---------------------------------------------------------------------------
# Parameter construction (plain JAX glue)
# ---------------------------------------------------------------------------
def get_sin_encodings(rel_pos_buckets, model_dim):
    """JAX port of torch get_sin_encodings (last row = padding = zeros)."""
    pe = jnp.zeros((rel_pos_buckets + 1, model_dim), jnp.float32)
    position = jnp.arange(rel_pos_buckets, dtype=jnp.float32)[:, None]
    div_term = jnp.exp(
        jnp.arange(0, model_dim, 2, dtype=jnp.float32) * -(math.log(10000.0) / model_dim)
    )
    pe = pe.at[:-1, 0::2].set(jnp.sin(position * div_term))
    pe = pe.at[:-1, 1::2].set(jnp.cos(position * div_term))
    return pe


def init_params(key, model_dim, head_count, rel_pos_buckets):
    dph = model_dim // head_count
    ks = jax.random.split(key, 10)
    scale = 1.0 / math.sqrt(model_dim)

    def lin(kw, kb):
        w = jax.random.normal(kw, (model_dim, model_dim), jnp.float32) * scale  # (out, in)
        b = jax.random.normal(kb, (model_dim,), jnp.float32) * 0.01
        return w, b

    wq, bq = lin(ks[0], ks[1])
    wk, bk = lin(ks[2], ks[3])
    wv, bv = lin(ks[4], ks[5])
    wo, bo = lin(ks[6], ks[7])
    u = jax.random.normal(ks[8], (head_count, dph), jnp.float32) * 0.02
    v = jax.random.normal(ks[9], (head_count, dph), jnp.float32) * 0.02
    pe_table = get_sin_encodings(rel_pos_buckets, model_dim)
    return dict(wq=wq, bq=bq, wk=wk, bk=bk, wv=wv, bv=bv, wo=wo, bo=bo,
                u=u, v=v, pe_table=pe_table)


# ---------------------------------------------------------------------------
# Pallas kernel: one batch element per grid step, whole sequence resident.
# ---------------------------------------------------------------------------
def _rel_attn_kernel(H, dph, NB,
                     x_ref, mask_ref, dist_ref,
                     wqkv_ref, bqkv_ref, wo_ref, bo_ref,
                     pe_ref, u_ref, v_ref,
                     out_ref, attn_ref):
    L = x_ref.shape[1]
    D = H * dph
    x = x_ref[0]                                              # (L, D)

    # ---- fused Q/K/V projection: one MXU matmul, contraction dim = D ----
    qkv = jnp.dot(x, wqkv_ref[...], preferred_element_type=jnp.float32) + bqkv_ref[...]

    inv_sqrt = jnp.float32(1.0 / math.sqrt(dph))

    def to_heads(t):                                          # (L, D) -> (H, L, dph)
        return jnp.transpose(t.reshape(L, H, dph), (1, 0, 2))

    q = to_heads(qkv[:, 0:D]) * inv_sqrt                      # scaled query (H, L, dph)
    k = to_heads(qkv[:, D:2 * D])                             # (H, L, dph)
    v = to_heads(qkv[:, 2 * D:3 * D])                         # (H, L, dph)

    u_b = u_ref[...]                                          # (H, 1, dph)
    v_b = v_ref[...]                                          # (H, 1, dph)

    # ---- content scores: a_c[h,q,k] = (q + u_h) . k  (head-batched MXU) ----
    a_c = jnp.einsum('hqd,hkd->hqk', q + u_b, k,
                     preferred_element_type=jnp.float32)      # (H, L, L)

    # ---- relative-position scores via the bucket table (no (L, L, D) gather) ----
    # S[h,q,n] = (q + v_h) . pe[h,n]
    S = jnp.einsum('hqd,hnd->hqn', q + v_b, pe_ref[...],
                   preferred_element_type=jnp.float32)        # (H, L, NB)
    dist = dist_ref[0]                                        # (L, L) int32 bucket ids
    onehot = (dist[:, :, None] ==
              jax.lax.broadcasted_iota(jnp.int32, (L, L, NB), 2)).astype(jnp.float32)
    # b_d[h,q,k] = S[h,q,dist[q,k]] == sum_n S[h,q,n] * onehot[q,k,n]  (batched over q)
    s_q = jnp.transpose(S, (1, 0, 2))                         # (L, H, NB), leading batch q
    b_d = jnp.transpose(
        jnp.einsum('qhn,qkn->qhk', s_q, onehot,
                   preferred_element_type=jnp.float32),
        (1, 0, 2))                                            # (H, L, L)

    scores = a_c + b_d
    mask = mask_ref[0]                                        # (L, L) int32, nonzero => masked
    scores = jnp.where(mask[None, :, :] != 0, jnp.float32(-1e18), scores)

    # ---- softmax over keys (f32) ----
    scores = scores - jnp.max(scores, axis=-1, keepdims=True)
    e = jnp.exp(scores)
    attn = e * pl.reciprocal(jnp.sum(e, axis=-1, keepdims=True))   # (H, L, L)
    attn_ref[0] = attn                                        # single lane-dense store

    # dropout: eval-mode identity

    # ---- context + output projection ----
    ctx = jnp.einsum('hqk,hkd->hqd', attn, v,
                     preferred_element_type=jnp.float32)      # (H, L, dph)
    ctx2d = jnp.transpose(ctx, (1, 0, 2)).reshape(L, D)       # unshape -> (L, D)
    out_ref[0] = jnp.dot(ctx2d, wo_ref[...],
                         preferred_element_type=jnp.float32) + bo_ref[...]


def multi_headed_rel_attention(inputs, mask, distances, params, head_count):
    """inputs: (B, L, D) f32; mask: (B, L, L) or (B, 1, L) bool/int (nonzero = masked);
    distances: (B, L, L) int32 bucket ids in [0, rel_pos_buckets]."""
    B, L, D = inputs.shape
    dph = D // head_count
    NB = params["pe_table"].shape[0]                          # rel_pos_buckets + 1

    # Fused QKV weight, pre-transposed to (in, out): x @ W == PyTorch x @ W.T.
    w_qkv = jnp.concatenate([params["wq"].T, params["wk"].T, params["wv"].T], axis=1)  # (D, 3D)
    b_qkv = jnp.concatenate([params["bq"], params["bk"], params["bv"]]).reshape(1, 3 * D)
    wo_t = params["wo"].T
    bo = params["bo"].reshape(1, D)
    # Relative-PE bucket table rearranged per head: (NB, D) -> (H, NB, dph).
    pe_h = params["pe_table"].reshape(NB, head_count, dph).transpose(1, 0, 2)
    u = params["u"].reshape(head_count, 1, dph)
    v = params["v"].reshape(head_count, 1, dph)

    # Dense (B, L, L) mask so the in-kernel block never reads padding (PyTorch broadcasts
    # a (B, 1, L) mask over the query axis; do the same here explicitly).
    mask_i = jnp.broadcast_to(mask.astype(jnp.int32), (B, L, L))
    dist_i = jnp.broadcast_to(distances.astype(jnp.int32), (B, L, L))

    kernel = functools.partial(_rel_attn_kernel, head_count, dph, NB)

    # NOTE: weight/bias/u/v/pe specs are grid-constant; with production shapes they should get
    # pipeline_mode=pl.Buffered(1) (or be loaded once to scratch) to avoid double-buffer VMEM.
    const2 = lambda b: (0, 0)
    const3 = lambda b: (0, 0, 0)
    in_specs = [
        pl.BlockSpec((1, L, D), lambda b: (b, 0, 0)),            # x
        pl.BlockSpec((1, L, L), lambda b: (b, 0, 0)),            # mask (dense)
        pl.BlockSpec((1, L, L), lambda b: (b, 0, 0)),            # distances (bucketed)
        pl.BlockSpec((D, 3 * D), const2),                        # W_qkv^T
        pl.BlockSpec((1, 3 * D), const2),                        # b_qkv
        pl.BlockSpec((D, D), const2),                            # W_o^T
        pl.BlockSpec((1, D), const2),                            # b_o
        pl.BlockSpec((head_count, NB, dph), const3),             # per-head PE bucket table
        pl.BlockSpec((head_count, 1, dph), const3),              # u
        pl.BlockSpec((head_count, 1, dph), const3),              # v
    ]
    out_specs = (
        pl.BlockSpec((1, L, D), lambda b: (b, 0, 0)),
        pl.BlockSpec((1, head_count, L, L), lambda b: (b, 0, 0, 0)),
    )
    out_shapes = (
        jax.ShapeDtypeStruct((B, L, D), jnp.float32),
        jax.ShapeDtypeStruct((B, head_count, L, L), jnp.float32),
    )

    return pl.pallas_call(
        kernel,
        out_shape=out_shapes,
        grid=(B,),
        in_specs=in_specs,
        out_specs=out_specs,
        compiler_params=pltpu.CompilerParams(dimension_semantics=("parallel",)),
    )(inputs, mask_i, dist_i, w_qkv, b_qkv, wo_t, bo, pe_h, u, v)


# ---------------------------------------------------------------------------
# Pure-JAX reference (mirrors the PyTorch forward for the 'enc_only' branch)
# ---------------------------------------------------------------------------
def reference(inputs, mask, distances, params, head_count):
    B, L, D = inputs.shape
    dph = D // head_count

    def lin(x, w, b):
        return jnp.dot(x, w.T, precision=_HI) + b

    def shape(t):
        return t.reshape(B, L, head_count, dph).transpose(0, 2, 1, 3)

    q = shape(lin(inputs, params["wq"], params["bq"])) / math.sqrt(dph)
    k = shape(lin(inputs, params["wk"], params["bk"]))
    v = shape(lin(inputs, params["wv"], params["bv"]))

    u = params["u"].reshape(1, head_count, 1, dph)
    a_c = jnp.einsum("bhqd,bhkd->bhqk", q + u, k, precision=_HI)
    rel = params["pe_table"][distances].reshape(B, L, L, head_count, dph)
    vv = params["v"].reshape(1, head_count, 1, dph)
    b_d = jnp.einsum("bhqd,bqkhd->bhqk", q + vv, rel, precision=_HI)
    scores = a_c + b_d
    scores = jnp.where(mask[:, None], jnp.float32(-1e18), scores)
    attn = jax.nn.softmax(scores, axis=-1)
    ctx = jnp.einsum("bhqk,bhkd->bhqd", attn, v, precision=_HI)
    ctx = ctx.transpose(0, 2, 1, 3).reshape(B, L, D)
    out = lin(ctx, params["wo"], params["bo"])
    return out, attn


if __name__ == "__main__":
    B, L, D, H = 2, 8, 32, 4
    REL_BUCKETS = 6

    key = jax.random.PRNGKey(0)
    k_param, k_x, k_dist = jax.random.split(key, 3)
    params = init_params(k_param, D, H, REL_BUCKETS)

    x = jax.random.normal(k_x, (B, L, D), jnp.float32)
    distances = jax.random.randint(k_dist, (B, L, L), 0, REL_BUCKETS + 1, dtype=jnp.int32)
    lens = jnp.array([6, 8], jnp.int32)
    # (B, L, L) boolean mask, True = masked (keys beyond the valid length), as per module spec.
    mask = jnp.broadcast_to(
        jnp.arange(L)[None, None, :] >= lens[:, None, None], (B, L, L))

    out, attn = multi_headed_rel_attention(x, mask, distances, params, H)
    out, attn = jax.block_until_ready((out, attn))

    out_ref, attn_ref = reference(x, mask, distances, params, H)
    assert out.shape == (B, L, D) and attn.shape == (B, H, L, L)
    assert bool(jnp.allclose(out, out_ref, atol=3e-3, rtol=3e-3)), "output mismatch"
    assert bool(jnp.allclose(attn, attn_ref, atol=2e-3, rtol=2e-3)), "attn mismatch"
    print("KERNEL_OK")
</pallas_src>

<mosaic_0001>
module attributes {stable_mosaic.version = 11 : i64} {
  func.func @_rel_attn_kernel(%arg0: i32, %arg1: memref<1x8x32xf32, #tpu.memory_space<vmem>>, %arg2: memref<1x8x8xi32, #tpu.memory_space<vmem>>, %arg3: memref<1x8x8xi32, #tpu.memory_space<vmem>>, %arg4: memref<32x96xf32, #tpu.memory_space<vmem>>, %arg5: memref<1x96xf32, #tpu.memory_space<vmem>>, %arg6: memref<32x32xf32, #tpu.memory_space<vmem>>, %arg7: memref<1x32xf32, #tpu.memory_space<vmem>>, %arg8: memref<4x7x8xf32, #tpu.memory_space<vmem>>, %arg9: memref<4x1x8xf32, #tpu.memory_space<vmem>>, %arg10: memref<4x1x8xf32, #tpu.memory_space<vmem>>, %arg11: memref<1x8x32xf32, #tpu.memory_space<vmem>>, %arg12: memref<1x4x8x8xf32, #tpu.memory_space<vmem>>) attributes {dimension_semantics = [#tpu.dimension_semantics<parallel>], iteration_bounds = array<i64: 2>, scalar_prefetch = 0 : i64, scratch_operands = 0 : i64, tpu.core_type = #tpu.core_type<tc>, window_params = [{transform_indices = @transform_0, window_bounds = array<i64: 1, 8, 32>}, {transform_indices = @transform_1, window_bounds = array<i64: 1, 8, 8>}, {transform_indices = @transform_2, window_bounds = array<i64: 1, 8, 8>}, {pipeline_mode = #tpu.pipeline_mode<synchronous>, transform_indices = @transform_3, window_bounds = array<i64: 32, 96>}, {pipeline_mode = #tpu.pipeline_mode<synchronous>, transform_indices = @transform_4, window_bounds = array<i64: 1, 96>}, {pipeline_mode = #tpu.pipeline_mode<synchronous>, transform_indices = @transform_5, window_bounds = array<i64: 32, 32>}, {pipeline_mode = #tpu.pipeline_mode<synchronous>, transform_indices = @transform_6, window_bounds = array<i64: 1, 32>}, {pipeline_mode = #tpu.pipeline_mode<synchronous>, transform_indices = @transform_7, window_bounds = array<i64: 4, 7, 8>}, {pipeline_mode = #tpu.pipeline_mode<synchronous>, transform_indices = @transform_8, window_bounds = array<i64: 4, 1, 8>}, {pipeline_mode = #tpu.pipeline_mode<synchronous>, transform_indices = @transform_9, window_bounds = array<i64: 4, 1, 8>}, {transform_indices = @transform_10, window_bounds = array<i64: 1, 8, 32>}, {transform_indices = @transform_11, window_bounds = array<i64: 1, 4, 8, 8>}]} {
    %c0 = arith.constant 0 : index
    %c0_0 = arith.constant 0 : index
    %c0_1 = arith.constant 0 : index
    %0 = vector.load %arg1[%c0, %c0_0, %c0_1] : memref<1x8x32xf32, #tpu.memory_space<vmem>>, vector<1x8x32xf32>
    %1 = vector.shape_cast %0 : vector<1x8x32xf32> to vector<8x32xf32>
    %c0_2 = arith.constant 0 : index
    %c0_3 = arith.constant 0 : index
    %2 = vector.load %arg4[%c0_2, %c0_3] : memref<32x96xf32, #tpu.memory_space<vmem>>, vector<32x96xf32>
    %cst = arith.constant dense<0.000000e+00> : vector<8x96xf32>
    %3 = tpu.matmul %1, %2, %cst {dimension_numbers = #tpu.dot_dimension_numbers<[1], [0], [0], [1], [0, 0, 1, 1], [], []>, precision = #tpu.contract_precision<fp32>} : vector<8x32xf32>, vector<32x96xf32>, vector<8x96xf32> -> vector<8x96xf32>
    %c0_4 = arith.constant 0 : index
    %c0_5 = arith.constant 0 : index
    %4 = vector.load %arg5[%c0_4, %c0_5] : memref<1x96xf32, #tpu.memory_space<vmem>>, vector<1x96xf32>
    %5 = vector.broadcast %4 : vector<1x96xf32> to vector<8x96xf32>
    %6 = arith.addf %3, %5 : vector<8x96xf32>
    %7 = vector.extract_strided_slice %6 {offsets = [0, 0], sizes = [8, 32], strides = [1, 1]} : vector<8x96xf32> to vector<8x32xf32>
    %8 = vector.shape_cast %7 : vector<8x32xf32> to vector<8x4x8xf32>
    %9 = tpu.transpose %8, [1, 0, 2] : vector<8x4x8xf32> -> vector<4x8x8xf32>
    %cst_6 = arith.constant 0.353553385 : f32
    %10 = vector.broadcast %cst_6 : f32 to vector<4x8x8xf32>
    %11 = arith.mulf %9, %10 : vector<4x8x8xf32>
    %12 = vector.extract_strided_slice %6 {offsets = [0, 32], sizes = [8, 32], strides = [1, 1]} : vector<8x96xf32> to vector<8x32xf32>
    %13 = vector.shape_cast %12 : vector<8x32xf32> to vector<8x4x8xf32>
    %14 = tpu.transpose %13, [1, 0, 2] : vector<8x4x8xf32> -> vector<4x8x8xf32>
    %15 = vector.extract_strided_slice %6 {offsets = [0, 64], sizes = [8, 32], strides = [1, 1]} : vector<8x96xf32> to vector<8x32xf32>
    %16 = vector.shape_cast %15 : vector<8x32xf32> to vector<8x4x8xf32>
    %17 = tpu.transpose %16, [1, 0, 2] : vector<8x4x8xf32> -> vector<4x8x8xf32>
    %c0_7 = arith.constant 0 : index
    %c0_8 = arith.constant 0 : index
    %c0_9 = arith.constant 0 : index
    %18 = vector.load %arg9[%c0_7, %c0_8, %c0_9] : memref<4x1x8xf32, #tpu.memory_space<vmem>>, vector<4x1x8xf32>
    %c0_10 = arith.constant 0 : index
    %c0_11 = arith.constant 0 : index
    %c0_12 = arith.constant 0 : index
    %19 = vector.load %arg10[%c0_10, %c0_11, %c0_12] : memref<4x1x8xf32, #tpu.memory_space<vmem>>, vector<4x1x8xf32>
    %20 = vector.broadcast %18 : vector<4x1x8xf32> to vector<4x8x8xf32>
    %21 = arith.addf %11, %20 : vector<4x8x8xf32>
    "tpu.trace_start"() <{level = 10 : i32, message = "hqd,hkd->hqk"}> : () -> ()
    %cst_13 = arith.constant dense<0.000000e+00> : vector<4x8x8xf32>
    %22 = tpu.matmul %21, %14, %cst_13 {dimension_numbers = #tpu.dot_dimension_numbers<[2], [2], [1], [1], [0, 0, 0, 1, 1, 1], [0], [0]>, precision = #tpu.contract_precision<fp32>} : vector<4x8x8xf32>, vector<4x8x8xf32>, vector<4x8x8xf32> -> vector<4x8x8xf32>
    "tpu.trace_stop"() : () -> ()
    %23 = vector.broadcast %19 : vector<4x1x8xf32> to vector<4x8x8xf32>
    %24 = arith.addf %11, %23 : vector<4x8x8xf32>
    %c0_14 = arith.constant 0 : index
    %c0_15 = arith.constant 0 : index
    %c0_16 = arith.constant 0 : index
    %25 = vector.load %arg8[%c0_14, %c0_15, %c0_16] : memref<4x7x8xf32, #tpu.memory_space<vmem>>, vector<4x7x8xf32>
    "tpu.trace_start"() <{level = 10 : i32, message = "hqd,hnd->hqn"}> : () -> ()
    %cst_17 = arith.constant dense<0.000000e+00> : vector<4x8x7xf32>
    %26 = tpu.matmul %24, %25, %cst_17 {dimension_numbers = #tpu.dot_dimension_numbers<[2], [2], [1], [1], [0, 0, 0, 1, 1, 1], [0], [0]>, precision = #tpu.contract_precision<fp32>} : vector<4x8x8xf32>, vector<4x7x8xf32>, vector<4x8x7xf32> -> vector<4x8x7xf32>
    "tpu.trace_stop"() : () -> ()
    %c0_18 = arith.constant 0 : index
    %c0_19 = arith.constant 0 : index
    %c0_20 = arith.constant 0 : index
    %27 = vector.load %arg3[%c0_18, %c0_19, %c0_20] : memref<1x8x8xi32, #tpu.memory_space<vmem>>, vector<1x8x8xi32>
    %28 = vector.shape_cast %27 : vector<1x8x8xi32> to vector<8x8xi32>
    %29 = vector.shape_cast %28 : vector<8x8xi32> to vector<8x8x1xi32>
    %30 = tpu.iota {dimensions = array<i32: 2>} : vector<8x8x7xi32>
    %31 = vector.broadcast %29 : vector<8x8x1xi32> to vector<8x8x7xi32>
    %32 = arith.cmpi eq, %31, %30 : vector<8x8x7xi32>
    %33 = arith.extui %32 : vector<8x8x7xi1> to vector<8x8x7xi32>
    %34 = arith.sitofp %33 : vector<8x8x7xi32> to vector<8x8x7xf32>
    %35 = tpu.transpose %26, [1, 0, 2] : vector<4x8x7xf32> -> vector<8x4x7xf32>
    "tpu.trace_start"() <{level = 10 : i32, message = "qhn,qkn->qhk"}> : () -> ()
    %cst_21 = arith.constant dense<0.000000e+00> : vector<8x4x8xf32>
    %36 = tpu.matmul %35, %34, %cst_21 {dimension_numbers = #tpu.dot_dimension_numbers<[2], [2], [1], [1], [0, 0, 0, 1, 1, 1], [0], [0]>, precision = #tpu.contract_precision<fp32>} : vector<8x4x7xf32>, vector<8x8x7xf32>, vector<8x4x8xf32> -> vector<8x4x8xf32>
    "tpu.trace_stop"() : () -> ()
    %37 = tpu.transpose %36, [1, 0, 2] : vector<8x4x8xf32> -> vector<4x8x8xf32>
    %38 = arith.addf %22, %37 : vector<4x8x8xf32>
    %c0_22 = arith.constant 0 : index
    %c0_23 = arith.constant 0 : index
    %c0_24 = arith.constant 0 : index
    %39 = vector.load %arg2[%c0_22, %c0_23, %c0_24] : memref<1x8x8xi32, #tpu.memory_space<vmem>>, vector<1x8x8xi32>
    %40 = vector.shape_cast %39 : vector<1x8x8xi32> to vector<8x8xi32>
    %41 = vector.shape_cast %40 : vector<8x8xi32> to vector<1x8x8xi32>
    %c0_i32 = arith.constant 0 : i32
    %42 = vector.broadcast %c0_i32 : i32 to vector<1x8x8xi32>
    %43 = arith.cmpi ne, %41, %42 : vector<1x8x8xi32>
    %cst_25 = arith.constant -9.99999984E+17 : f32
    %44 = vector.shape_cast %43 : vector<1x8x8xi1> to vector<1x8x8xi1>
    %45 = vector.broadcast %44 : vector<1x8x8xi1> to vector<4x8x8xi1>
    %46 = vector.broadcast %cst_25 : f32 to vector<4x8x8xf32>
    %47 = arith.select %45, %46, %38 : vector<4x8x8xi1>, vector<4x8x8xf32>
    %cst_26 = arith.constant dense<0xFF800000> : vector<4x8xf32>
    %48 = vector.multi_reduction <maximumf>, %47, %cst_26 [2] : vector<4x8x8xf32> to vector<4x8xf32>
    %49 = vector.shape_cast %48 : vector<4x8xf32> to vector<4x8x1xf32>
    %50 = vector.broadcast %49 : vector<4x8x1xf32> to vector<4x8x8xf32>
    %51 = arith.subf %47, %50 : vector<4x8x8xf32>
    %52 = math.exp %51 : vector<4x8x8xf32>
    %cst_27 = arith.constant dense<0.000000e+00> : vector<4x8xf32>
    %53 = vector.multi_reduction <add>, %52, %cst_27 [2] : vector<4x8x8xf32> to vector<4x8xf32>
    %54 = vector.shape_cast %53 : vector<4x8xf32> to vector<4x8x1xf32>
    %55 = tpu.reciprocal %54 : vector<4x8x1xf32> -> vector<4x8x1xf32>
    %56 = vector.broadcast %55 : vector<4x8x1xf32> to vector<4x8x8xf32>
    %57 = arith.mulf %52, %56 : vector<4x8x8xf32>
    %c0_28 = arith.constant 0 : index
    %c0_29 = arith.constant 0 : index
    %c0_30 = arith.constant 0 : index
    %c0_31 = arith.constant 0 : index
    %58 = vector.load %arg12[%c0_28, %c0_29, %c0_30, %c0_31] : memref<1x4x8x8xf32, #tpu.memory_space<vmem>>, vector<1x4x8x8xf32>
    %59 = vector.shape_cast %58 : vector<1x4x8x8xf32> to vector<4x8x8xf32>
    %60 = vector.shape_cast %57 : vector<4x8x8xf32> to vector<1x4x8x8xf32>
    tpu.vector_store %arg12[%c0_28, %c0_29, %c0_30, %c0_31], %60 {strides = array<i32>} : memref<1x4x8x8xf32, #tpu.memory_space<vmem>>, vector<1x4x8x8xf32>,
    "tpu.trace_start"() <{level = 10 : i32, message = "hqk,hkd->hqd"}> : () -> ()
    %cst_32 = arith.constant dense<0.000000e+00> : vector<4x8x8xf32>
    %61 = tpu.matmul %57, %17, %cst_32 {dimension_numbers = #tpu.dot_dimension_numbers<[2], [1], [1], [2], [0, 0, 0, 1, 1, 2], [0], [0]>, precision = #tpu.contract_precision<fp32>} : vector<4x8x8xf32>, vector<4x8x8xf32>, vector<4x8x8xf32> -> vector<4x8x8xf32>
    "tpu.trace_stop"() : () -> ()
    %62 = tpu.transpose %61, [1, 0, 2] : vector<4x8x8xf32> -> vector<8x4x8xf32>
    %63 = vector.shape_cast %62 : vector<8x4x8xf32> to vector<8x32xf32>
    %c0_33 = arith.constant 0 : index
    %c0_34 = arith.constant 0 : index
    %64 = vector.load %arg6[%c0_33, %c0_34] : memref<32x32xf32, #tpu.memory_space<vmem>>, vector<32x32xf32>
    %cst_35 = arith.constant dense<0.000000e+00> : vector<8x32xf32>
    %65 = tpu.matmul %63, %64, %cst_35 {dimension_numbers = #tpu.dot_dimension_numbers<[1], [0], [0], [1], [0, 0, 1, 1], [], []>, precision = #tpu.contract_precision<fp32>} : vector<8x32xf32>, vector<32x32xf32>, vector<8x32xf32> -> vector<8x32xf32>
    %c0_36 = arith.constant 0 : index
    %c0_37 = arith.constant 0 : index
    %66 = vector.load %arg7[%c0_36, %c0_37] : memref<1x32xf32, #tpu.memory_space<vmem>>, vector<1x32xf32>
    %67 = vector.broadcast %66 : vector<1x32xf32> to vector<8x32xf32>
    %68 = arith.addf %65, %67 : vector<8x32xf32>
    %c0_38 = arith.constant 0 : index
    %c0_39 = arith.constant 0 : index
    %c0_40 = arith.constant 0 : index
    %69 = vector.load %arg11[%c0_38, %c0_39, %c0_40] : memref<1x8x32xf32, #tpu.memory_space<vmem>>, vector<1x8x32xf32>
    %70 = vector.shape_cast %69 : vector<1x8x32xf32> to vector<8x32xf32>
    %71 = vector.shape_cast %68 : vector<8x32xf32> to vector<1x8x32xf32>
    tpu.vector_store %arg11[%c0_38, %c0_39, %c0_40], %71 {strides = array<i32>} : memref<1x8x32xf32, #tpu.memory_space<vmem>>, vector<1x8x32xf32>,
    return
  }
  func.func @transform_0(%arg0: i32) -> (i32, i32, i32) {
    %c0_i32 = arith.constant 0 : i32
    %c0_i32_0 = arith.constant 0 : i32
    %c0_i32_1 = arith.constant 0 : i32
    return %arg0, %c0_i32, %c0_i32_0 : i32, i32, i32
  }
  func.func @transform_1(%arg0: i32) -> (i32, i32, i32) {
    %c0_i32 = arith.constant 0 : i32
    %c0_i32_0 = arith.constant 0 : i32
    %c0_i32_1 = arith.constant 0 : i32
    return %arg0, %c0_i32, %c0_i32_0 : i32, i32, i32
  }
  func.func @transform_2(%arg0: i32) -> (i32, i32, i32) {
    %c0_i32 = arith.constant 0 : i32
    %c0_i32_0 = arith.constant 0 : i32
    %c0_i32_1 = arith.constant 0 : i32
    return %arg0, %c0_i32, %c0_i32_0 : i32, i32, i32
  }
  func.func @transform_3(%arg0: i32) -> (i32, i32) {
    %c0_i32 = arith.constant 0 : i32
    %c0_i32_0 = arith.constant 0 : i32
    %c0_i32_1 = arith.constant 0 : i32
    return %c0_i32, %c0_i32_0 : i32, i32
  }
  func.func @transform_4(%arg0: i32) -> (i32, i32) {
    %c0_i32 = arith.constant 0 : i32
    %c0_i32_0 = arith.constant 0 : i32
    %c0_i32_1 = arith.constant 0 : i32
    return %c0_i32, %c0_i32_0 : i32, i32
  }
  func.func @transform_5(%arg0: i32) -> (i32, i32) {
    %c0_i32 = arith.constant 0 : i32
    %c0_i32_0 = arith.constant 0 : i32
    %c0_i32_1 = arith.constant 0 : i32
    return %c0_i32, %c0_i32_0 : i32, i32
  }
  func.func @transform_6(%arg0: i32) -> (i32, i32) {
    %c0_i32 = arith.constant 0 : i32
    %c0_i32_0 = arith.constant 0 : i32
    %c0_i32_1 = arith.constant 0 : i32
    return %c0_i32, %c0_i32_0 : i32, i32
  }
  func.func @transform_7(%arg0: i32) -> (i32, i32, i32) {
    %c0_i32 = arith.constant 0 : i32
    %c0_i32_0 = arith.constant 0 : i32
    %c0_i32_1 = arith.constant 0 : i32
    %c0_i32_2 = arith.constant 0 : i32
    return %c0_i32, %c0_i32_0, %c0_i32_1 : i32, i32, i32
  }
  func.func @transform_8(%arg0: i32) -> (i32, i32, i32) {
    %c0_i32 = arith.constant 0 : i32
    %c0_i32_0 = arith.constant 0 : i32
    %c0_i32_1 = arith.constant 0 : i32
    %c0_i32_2 = arith.constant 0 : i32
    return %c0_i32, %c0_i32_0, %c0_i32_1 : i32, i32, i32
  }
  func.func @transform_9(%arg0: i32) -> (i32, i32, i32) {
    %c0_i32 = arith.constant 0 : i32
    %c0_i32_0 = arith.constant 0 : i32
    %c0_i32_1 = arith.constant 0 : i32
    %c0_i32_2 = arith.constant 0 : i32
    return %c0_i32, %c0_i32_0, %c0_i32_1 : i32, i32, i32
  }
  func.func @transform_10(%arg0: i32) -> (i32, i32, i32) {
    %c0_i32 = arith.constant 0 : i32
    %c0_i32_0 = arith.constant 0 : i32
    %c0_i32_1 = arith.constant 0 : i32
    return %arg0, %c0_i32, %c0_i32_0 : i32, i32, i32
  }
  func.func @transform_11(%arg0: i32) -> (i32, i32, i32, i32) {
    %c0_i32 = arith.constant 0 : i32
    %c0_i32_0 = arith.constant 0 : i32
    %c0_i32_1 = arith.constant 0 : i32
    %c0_i32_2 = arith.constant 0 : i32
    return %arg0, %c0_i32, %c0_i32_0, %c0_i32_1 : i32, i32, i32, i32
  }
}

</mosaic_0001>

<bundles_post_ra>
// kernel: tpu_custom_call.1
= control target key start
LH: loop header
LB: loop body
LE: loop exit
PB: predicated region body
PF: predicated region fallthrough
CT: control target
= control target key end

     0   :  { %s14768_s0 = inlined_call_operand.hbm [shape: f32[2,8,32], index: 0, kind: input, shape index: {}]   ;;  %s14769_s1 = inlined_call_operand.hbm [shape: s32[2,8,8], index: 1, kind: input, shape index: {}]   ;;  %s14770_s2 = inlined_call_operand.hbm [shape: s32[2,8,8], index: 2, kind: input, shape index: {}]   ;;  %s14771_s3 = inlined_call_operand.vmem [shape: f32[32,96], index: 3, kind: input, shape index: {}]   ;;  %s14772_s4 = inlined_call_operand.vmem [shape: f32[1,96], index: 4, kind: input, shape index: {}]   ;;  %s14773_s5 = inlined_call_operand.vmem [shape: f32[32,32], index: 5, kind: input, shape index: {}]   ;;  %s14774_s6 = inlined_call_operand.vmem [shape: f32[1,32], index: 6, kind: input, shape index: {}]   ;;  %s14775_s7 = inlined_call_operand.vmem [shape: f32[4,7,8], index: 7, kind: input, shape index: {}]   ;;  %s14776_s8 = inlined_call_operand.vmem [shape: f32[4,1,8], index: 8, kind: input, shape index: {}]   ;;  %s14777_s9 = inlined_call_operand.vmem [shape: f32[4,1,8], index: 9, kind: input, shape index: {}]   ;;  %s14778_s10 = inlined_call_operand.hbm [shape: f32[2,8,32], index: 10, kind: output, shape index: {0}]   ;;  %s14779_s11 = inlined_call_operand.hbm [shape: f32[2,4,8,8], index: 11, kind: output, shape index: {1}]  }
   0x1   :  { %14792 = sst [smem:[#allocation21_spill]] %s14769_s1 }
   0x2   :  { %14793 = sst [smem:[#allocation22_spill]] %s14774_s6 }
   0x3   :  { %14794 = sst [smem:[#allocation23_spill]] %s14778_s10 }
   0x4   :  { %17 = vsyncpa [#allocation3], 0 }
   0x5   :  { %19 = vsyncpa [#allocation3 + $0x1], 0 }
   0x6   :  { %20 = vsyncpa [#allocation6], 0 }
   0x7   :  { %22 = vsyncpa [#allocation6 + $0x1], 0 }
   0x8   :  { %23 = vsyncpa [#allocation4], 0 }
   0x9   :  { %25 = vsyncpa [#allocation4 + $0x1], 0 }
   0xa   :  { %26 = vsyncpa [#allocation10], 0 }
   0xb   :  { %28 = vsyncpa [#allocation10 + $0x1], 0  ;;  %s13403_s17 = smov 0   ;;  %s13405_s18 = smov 0  }
   0xc   :  { %s13407_s19 = smov 0   ;;  %s13409_s20 = smov 0  }
   0xd LB: > { %14795 = sst [smem:[#allocation15_spill]] %s13310_s17  ;;  %s13424_s21 = sadd.s32 4294967295, %s13322_s20   ;;  %s13322_s20 = sphi %s13409_s20, %s14822_s20   ;;  %s13318_s19 = sphi %s13407_s19, %s14824_s19   ;;  %s13314_s18 = sphi %s13405_s18, %s14826_s18   ;;  %s13310_s17 = sphi %s13403_s17, %s14825_s17  }
   0xe   : > { %14796 = sst [smem:[#allocation16_spill]] %s13318_s19  ;;  %s11637_s22 = sadd.s32 4294967294, %s13322_s20  }
   0xf   : > { %14797 = sst [smem:[#allocation17_spill]] %s13322_s20  ;;  %s13428_s23 = sadd.s32 1, %s13322_s20  }
  0x10   : > { %14798 = sst [smem:[#allocation18_spill]] %s13428_s23  ;;  %s41_s24 = sadd.s32 1, %s13318_s19 }
  0x11   : > { %s38_s25 = ssub.s32 %s13322_s20, %s13428_s23  ;;  %p48_p0 = scmp.ne.s32.totalorder %s13318_s19, %s13314_s18 }
  0x12   : > { %p39_p1 = scmp.eq.s32.totalorder %s38_s25, 0  ;;  %p49_p2 = scmp.eq.s32.totalorder %s13322_s20, 0 }
  0x13   : > { %p54_p3 = scmp.ne.s32.totalorder %s13314_s18, %s13310_s17  ;;  %p55_p4 = scmp.eq.s32.totalorder %s13424_s21, 0 }
  0x14   : > { %s13440_s26 = scalar_select %p39_p1, %s13318_s19, %s41_s24  }
  0x15   : > { %p50_p5 = por %p49_p2, %p48_p0  ;;  %p13442_p6 = por %p55_p4, %p54_p3 }
  0x16   : > { %14799 = sst [smem:[#allocation19_spill]] %s13440_s26  ;;  %p277_p7 = scmp.eq.s32.totalorder %s13424_s21, 1 }
  0x17   : > { %s14800_s27 = scalar_select %p13442_p6, 1, 0 }
  0x18   : > { %p283_p8 = scmp.eq.s32.totalorder %s11637_s22, 1  ;;  %p13066_p10 = scmp.lt.s32.totalorder %s13322_s20, 2 }
  0x19   : > { %p13449_p11 = por %p277_p7, %p48_p0  ;;  %s14780_s30 = sand.u32 1, %s13318_s19  }
  0x1a   : > { %p13453_p12 = por %p283_p8, %p54_p3  ;;  %s13459_s12 = sshll.u32 %s13322_s20, 7 }
  0x1b   : > { %s14801_s28 = scalar_select %p13449_p11, 1, 0 }
  0x1c   : > { %s14802_s29 = scalar_select %p13453_p12, 1, 0 }
  0x1d   : > { %s13463_s13 = sshll.u32 %s14780_s30, 3  ;;  %p13465_p13 = pnand %p13066_p10, %p50_p5 }
  0x1e   : > { %14803 = sst [smem:[#allocation20_spill]] %s14802_s29  ;;  %s368_s15 = sand.u32 1, %s13322_s20  }
  0x1f   : > { %s14804_s14 = scalar_select %p13465_p13, 1, 0 }
  0x20   : > { %s14805_s1 = sld [smem:[#allocation21_spill]]  ;;  %s372_s25 = scalar_lea.vmem [#allocation5], %s13463_s13 }
  0x21   : > { %s379_s26 = sshll.u32 %s372_s25, 4  ;;  %s13480_s30 = scalar_lea.sflag [#allocation6], %s368_s15  ;;  %s13477_s26 = int_to_ptr.vmem [resolvable:$true] %s379_s26 }
  0x22   : > { %p13486_p2 = pneg %p13465_p13 }
  0x26   : > { %s13474_s24 = scalar_lea.hbm %s14805_s1, %s13459_s12  ;;  %s13135_s25 = scalar_lea.hbm %s14805_s1, 256 }
  0x27   : > { %s13130_s23 = scalar_lea.hbm %s13474_s24, 128  ;;  %p13136_p5 = scmp.lt.u32.totalorder %s13474_s24, %s14805_s1 }
  0x28   : > { %p13131_p1 = scmp.ne.s32.totalorder %s13474_s24, %s13130_s23  ;;  %p13137_p7 = scmp.lt.u32.totalorder %s13135_s25, %s13130_s23 }
  0x29   : > { %p13139_p10 = scmp.lt.u32.totalorder %s13130_s23, %s13474_s24 }
  0x2a   : > { %p13133_p3 = pnand %p13486_p2, %p13131_p1  ;;  %p13138_p8 = por %p13137_p7, %p13136_p5 }
  0x2c   : > { %p13134_p4 = pneg %p13133_p3  ;;  %p13140_p9 = por %p13139_p10, %p13138_p8 }
  0x2e   : > { %p13141_p0 = pnand %p13140_p9, %p13134_p4 }
  0x30   : > { %13144 = shalt.err (!%p13141_p0)
}
  0x31   : > { %s13145_s15 = scalar_lea.vmem %s13477_s26, 128  ;;  %s13324_s16 = smov [#allocation5]  }
  0x32   : > { %p13146_p1 = scmp.ne.s32.totalorder %s13477_s26, %s13145_s15  ;;  %s13150_s22 = sshll.u32 %s13324_s16, 4  ;;  %s13151_s22 = int_to_ptr.vmem [resolvable:$false] %s13150_s22 }
  0x33   : > { %s13152_s10 = scalar_lea.vmem %s13151_s22, 256  ;;  %p13153_p11 = scmp.lt.s32.totalorder %s13477_s26, %s13151_s22 }
  0x34   : > { %p13148_p3 = pnand %p13146_p1, %p13486_p2  ;;  %p13154_p6 = scmp.lt.s32.totalorder %s13152_s10, %s13145_s15 }
  0x36   : > { %p13149_p12 = pneg %p13148_p3  ;;  %p13155_p5 = por %p13154_p6, %p13153_p11 }
  0x38   : > { %p13156_p7 = pnand %p13155_p5, %p13149_p12 }
  0x3a   : > { %13159 = shalt.err (!%p13156_p7)
}
  0x3b   : > { %13055 = dma.hbm_to_vmem [thread:$0]  (!%p13465_p13), %s13474_s24, 128, %s13477_s26, %s13480_s30  }
  0x3c   : > { %p402_p9 = scmp.lt.s32.totalorder %s13322_s20, 3  ;;  %s13515_s25 = scalar_lea.hbm %s14768_s0, %s13459_s12 }
  0x3d   : > { %p14807_p6 = scmp.ge.s32.totalorder %s13322_s20, 1  ;;  %s354_s16 = scalar_lea.vmem [#allocation2], %s13463_s13 }
  0x3e   : > { %s361_s22 = sshll.u32 %s354_s16, 4  ;;  %s14809_s10 = sand.u32 1, %s13318_s19   ;;  %s362_s22 = int_to_ptr.vmem [resolvable:$true] %s361_s22 }
  0x3f   : > { %p13519_p11 = pnand %p14807_p6, %p402_p9  ;;  %s351_s26 = scalar_lea.sflag [#allocation3], %s14809_s10 }
  0x40   : > { %s13160_s24 = scalar_lea.hbm %s13515_s25, 128  ;;  %s13165_s1 = scalar_lea.hbm %s14768_s0, 256 }
  0x41   : > { %s14808_s15 = scalar_select %p13519_p11, 1, 0 }
  0x42   : > { %p13161_p12 = scmp.ne.s32.totalorder %s13515_s25, %s13160_s24  ;;  %p13166_p8 = scmp.lt.u32.totalorder %s13515_s25, %s14768_s0 }
  0x43   : > { %p13167_p10 = scmp.lt.u32.totalorder %s13165_s1, %s13160_s24  ;;  %p13169_p3 = scmp.lt.u32.totalorder %s13160_s24, %s13515_s25 }
  0x44   : > { %p13163_p0 = pnand %p13161_p12, %p13486_p2 }
  0x45   : > { %p13168_p1 = por %p13167_p10, %p13166_p8 }
  0x46   : > { %p13164_p4 = pneg %p13163_p0 }
  0x47   : > { %p13170_p5 = por %p13169_p3, %p13168_p1 }
  0x49   : > { %p13171_p7 = pnand %p13170_p5, %p13164_p4 }
  0x4b   : > { %13174 = shalt.err (!%p13171_p7)
}
  0x4c   : > { %s13175_s16 = scalar_lea.vmem %s362_s22, 128  ;;  %s13325_s10 = smov [#allocation2]  }
  0x4d   : > { %p13176_p9 = scmp.ne.s32.totalorder %s362_s22, %s13175_s16  ;;  %s13180_s19 = sshll.u32 %s13325_s10, 4  ;;  %s13181_s19 = int_to_ptr.vmem [resolvable:$false] %s13180_s19 }
  0x4e   : > { %s13182_s17 = scalar_lea.vmem %s13181_s19, 256  ;;  %p13183_p0 = scmp.lt.s32.totalorder %s362_s22, %s13181_s19 }
  0x4f   : > { %p13178_p6 = pnand %p13176_p9, %p13486_p2  ;;  %p13184_p11 = scmp.lt.s32.totalorder %s13182_s17, %s13175_s16 }
  0x51   : > { %p13179_p12 = pneg %p13178_p6  ;;  %p13185_p13 = por %p13184_p11, %p13183_p0 }
  0x53   : > { %p13186_p8 = pnand %p13185_p13, %p13179_p12 }
  0x55   : > { %13189 = shalt.err (!%p13186_p8)
}
  0x56   : > { %p14810_p10 = scmp.ne.s32.totalorder %s14804_s14, 0  ;;  %s13547_s20 = scalar_lea.hbm %s14770_s2, %s13459_s12 }
  0x57   : > { %s390_s19 = scalar_lea.vmem [#allocation7], %s13463_s13  ;;  %s13190_s23 = scalar_lea.hbm %s13547_s20, 128 }
  0x58   : > { %13052 = dma.hbm_to_vmem [thread:$0]  (!%p14810_p10), %s13515_s25, 128, %s362_s22, %s351_s26  }
  0x59   : > { %s397_s24 = sshll.u32 %s390_s19, 4  ;;  %p13191_p13 = scmp.ne.s32.totalorder %s13547_s20, %s13190_s23  ;;  %s398_s24 = int_to_ptr.vmem [resolvable:$true] %s397_s24 }
  0x5a   : > { %s13195_s25 = scalar_lea.hbm %s14770_s2, 256  ;;  %p13196_p1 = scmp.lt.u32.totalorder %s13547_s20, %s14770_s2 }
  0x5b   : > { %p13193_p11 = pnand %p13191_p13, %p13486_p2  ;;  %p13197_p3 = scmp.lt.u32.totalorder %s13195_s25, %s13190_s23 }
  0x5c   : > { %p13199_p7 = scmp.lt.u32.totalorder %s13190_s23, %s13547_s20 }
  0x5d   : > { %p13194_p4 = pneg %p13193_p11  ;;  %p13198_p5 = por %p13197_p3, %p13196_p1 }
  0x5f   : > { %p13200_p9 = por %p13199_p7, %p13198_p5 }
  0x61   : > { %p13201_p6 = pnand %p13200_p9, %p13194_p4 }
  0x63   : > { %13204 = shalt.err (!%p13201_p6)
}
  0x64   : > { %s13205_s12 = scalar_lea.vmem %s398_s24, 128  ;;  %s13326_s13 = smov [#allocation7]  }
  0x65   : > { %p13206_p12 = scmp.ne.s32.totalorder %s398_s24, %s13205_s12  ;;  %s13210_s17 = sshll.u32 %s13326_s13, 4  ;;  %s13211_s17 = int_to_ptr.vmem [resolvable:$false] %s13210_s17 }
  0x66   : > { %s13212_s1 = scalar_lea.vmem %s13211_s17, 256  ;;  %p13213_p13 = scmp.lt.s32.totalorder %s398_s24, %s13211_s17 }
  0x67   : > { %p13208_p0 = pnand %p13206_p12, %p13486_p2  ;;  %p13214_p11 = scmp.lt.s32.totalorder %s13212_s1, %s13205_s12 }
  0x69   : > { %p13209_p8 = pneg %p13208_p0  ;;  %p13215_p10 = por %p13214_p11, %p13213_p13 }
  0x6b   : > { %p13216_p1 = pnand %p13215_p10, %p13209_p8 }
  0x6d   : > { %13219 = shalt.err (!%p13216_p1)
}
  0x6e   : > { %p14811_p3 = scmp.ne.s32.totalorder %s14804_s14, 0  ;;  %p14812_p4 = scmp.ne.s32.totalorder %s14808_s15, 0 }
  0x6f   : > { %s13571_s29 = sand.u32 (!%p14812_p4), 1, %s13314_s18   ;;  %p14813_p2 = scmp.ne.s32.totalorder (!%p14812_p4), %s14800_s27, 0 }
  0x70   : > { %13058 = dma.hbm_to_vmem [thread:$0]  (!%p14811_p3), %s13547_s20, 128, %s398_s24, %s13480_s30  }
  0x71   : > { %406 = sbr.rel (%p14812_p4) target bundleno = 2362 (0x93a), region = 60  ;;  %s13574_s6 = sshll.u32 (!%p14812_p4), %s13571_s29, 3 }
  0x72   : > { %s409_s19 = scalar_lea.sflag (!%p14812_p4), [#allocation3], %s13571_s29  ;;  %s412_s23 = scalar_lea.vmem (!%p14812_p4), [#allocation2], %s13574_s6 }
  0x78   : > { %13293 = dma.done.wait (%p14813_p2), %s409_s19, 128  }
  0x79   : > { %13295 = vsyncadd (%p14813_p2), %s409_s19, 4294967168  ;;  %s417_s30 = sand.u32 1, %s13424_s21   ;;  %s421_s15 = scalar_lea.vmem [#allocation5], %s13574_s6 }
  0x7a   : > { %s418_s14 = scalar_lea.sflag [#allocation6], %s417_s30 }
  0x7b   : > { %13297 = dma.done.wait (%p14813_p2), %s418_s14, 256  }
  0x7c   : > { %13299 = vsyncadd (%p14813_p2), %s418_s14, 4294967040  ;;  %v13327_v0 = vmov 0.0|0.0   ;;  %vm13328_vm0 = vmmov 0   ;;  %v13329_v1 = vmov 0.0   ;;  %vm496_vm1 = vcmask 261120   ;;  %v485_v2 = vld [vmem:[%s14771_s3] sm:$0xff] }
  0x7d   : > { %12742 = vmatprep.subr.bf16.mxu1 %v13327_v0  ;;  %12760 = vmatprep.subr.bf16.mxu0 %v13327_v0  ;;  %v486_v3 = vld [vmem:[%s14771_s3 + $0x8] sm:$0xff]  ;;  %v487_v4 = vld [vmem:[%s14771_s3 + $0x10] sm:$0xff]  ;;  %v501_v5 = vand.u32 4294901760, %v485_v2  ;;  %v488_v7 = vld [vmem:[%s14771_s3 + $0x18] sm:$0xff]  ;;  %v1000_v41 = vlaneseq  ;;  %s430_s17 = scalar_lea.vmem [#allocation7], %s13574_s6  ;;  %s13330_s1 = smov 104  }
  0x7e   : > { %12018 = vmatprep.mubr.msk.f32.mxu1 %vm13328_vm0, %v13329_v1  ;;  %12051 = vmatprep.mubr.msk.f32.mxu0 %vm13328_vm0, %v13329_v1  ;;  %v504_v6 = vand.u32 4294901760, %v486_v3  ;;  %v507_v8 = vand.u32 4294901760, %v487_v4  ;;  %v484_v9 = vld [vmem:[%s412_s23] sm:$0xff]  ;;  %v510_v10 = vand.u32 4294901760, %v488_v7  ;;  %s13331_s19 = smov 120   ;;  %s13332_s23 = smov 112  }
  0x7f   : > { %v498_v11 = vsel %vm496_vm1, %v484_v9, 0  ;;  %v581_v13 = vsub.f32 %v485_v2, %v501_v5  ;;  %v13632_v42 = vshrl.u32 %v1000_v41, 7  ;;  %v11652_v43 = vld [vmem:[%s14772_s4] ss:$0 sm:$0xff]  ;;  %vm1499_vm2 = vcmask 64512   ;;  %s13333_s27 = smov 96  }
  0x80   : > { %v12743_v12 = vpack.c.bf16 %v504_v6, %v501_v5  ;;  %v588_v14 = vsub.f32 %v486_v3, %v504_v6  ;;  %v595_v15 = vsub.f32 %v487_v4, %v507_v8  ;;  %v602_v16 = vsub.f32 %v488_v7, %v510_v10  ;;  %v3308_v50 = vld [vmem:[%s430_s17] sm:$0xff]  ;;  %v1497_v3 = vld [vmem:[%s14775_s7 + $0x10] sm:$0x7f]  ;;  %s11651_s26 = sshll.u32 %s13571_s29, 5  ;;  %s13337_s24 = smov 16  }
  0x81   : > { %v569_v17 = vand.u32 4294901760, %v498_v11  ;;  %v12746_v18 = vpack.c.bf16 %v510_v10, %v507_v8  ;;  %v582_v19 = vand.u32 4294901760, %v581_v13  ;;  %v3311_v49 = vsub.s32 0, %v13632_v42  ;;  %v1495_v63 = vld [vmem:[%s14775_s7] sm:$0x7f]  ;;  %s14494_s12 = scalar_lea.vmem [#allocation9], %s11651_s26 }
  0x82   : > { %12744 = vmatpush3.bf16.msra.mxu1 %v12743_v12  ;;  %12762 = vmatpush3.bf16.msra.mxu0 %v12743_v12  ;;  %v589_v20 = vand.u32 4294901760, %v588_v14  ;;  %v596_v21 = vand.u32 4294901760, %v595_v15  ;;  %v603_v23 = vand.u32 4294901760, %v602_v16  ;;  %v12755_v39 = vpack.c.bf16 %v588_v14, %v581_v13  ;;  %s13339_s16 = smov 24   ;;  %s11709_s10 = sshll.u32 %s13424_s21, 9 }
  0x83   : > { %12745 = vmatprep.subr.bf16.mxu1 %v13327_v0  ;;  %12763 = vmatprep.subr.bf16.mxu0 %v13327_v0  ;;  %v570_v22 = vsub.f32 %v498_v11, %v569_v17  ;;  %v583_v24 = vsub.f32 %v581_v13, %v582_v19  ;;  %v12758_v40 = vpack.c.bf16 %v602_v16, %v595_v15  ;;  %v3325_v53 = vsub.s32 2, %v13632_v42  ;;  %s11489_s25 = sshll.u32 %s14494_s12, 4  ;;  %s14686_s26 = scalar_lea.hbm %s14779_s11, %s11709_s10  ;;  %s14688_s25 = int_to_ptr.vmem [resolvable:$true] %s11489_s25 }
  0x84   : > { %v590_v25 = vsub.f32 %v588_v14, %v589_v20  ;;  %v597_v26 = vsub.f32 %v595_v15, %v596_v21  ;;  %v604_v28 = vsub.f32 %v602_v16, %v603_v23  ;;  %v12767_v31 = vpack.c.bf16 %v589_v20, %v582_v19  ;;  %s11463_s13 = scalar_lea.sflag [#allocation10], %s13571_s29  ;;  %s13220_s17 = scalar_lea.vmem %s14688_s25, 512 }
  0x85   : > { %v571_v27 = vand.u32 4294901760, %v570_v22  ;;  %v584_v29 = vand.u32 4294901760, %v583_v24  ;;  %v12770_v37 = vpack.c.bf16 %v603_v23, %v596_v21  ;;  %v3312_v52 = vrot.slane %v3308_v50, %v3311_v49  ;;  %p13221_p10 = scmp.ne.s32.totalorder %s14688_s25, %s13220_s17  ;;  %p14814_p5 = scmp.ne.s32.totalorder %s14801_s28, 0 }
  0x86   : > { %12747 = vmatpush3.bf16.msra.mxu1 %v12746_v18  ;;  %12765 = vmatpush3.bf16.msra.mxu0 %v12746_v18  ;;  %v591_v30 = vand.u32 4294901760, %v590_v25  ;;  %v598_v34 = vand.u32 4294901760, %v597_v26  ;;  %v605_v35 = vand.u32 4294901760, %v604_v28  ;;  %v3318_v54 = vsub.s32 1, %v13632_v42 }
  0x87   : > { %v572_v32 = vsub.f32 %v570_v22, %v571_v27  ;;  %12748 = vmatprep.subr.bf16.mxu1 %v13327_v0  ;;  %12766 = vmatprep.subr.bf16.mxu0 %v13327_v0  ;;  %v3326_v55 = vrot.slane %v3308_v50, %v3325_v53  ;;  %v3339_v56 = vsub.s32 4, %v13632_v42  ;;  %v3332_v58 = vsub.s32 3, %v13632_v42  ;;  %p13222_p7 = pnand %p13221_p10, %p14814_p5 }
  0x88   : > { %v12749_v33 = vpack.c.bf16 %v591_v30, %v584_v29  ;;  %v12752_v38 = vpack.c.bf16 %v605_v35, %v598_v34  ;;  %v3319_v57 = vrot.slane %v3308_v50, %v3318_v54  ;;  %v3353_v59 = vsub.s32 6, %v13632_v42 }
  0x89   : > { %v573_v36 = vand.u32 4294901760, %v572_v32  ;;  %12052 = vmatmul.mubr.f32.vlgmr.msra.gmra.mrb[0].mxu0 %v571_v27  ;;  %v3340_v60 = vrot.slane %v3308_v50, %v3339_v56  ;;  %v3333_v61 = vrot.slane %v3308_v50, %v3332_v58  ;;  %v3346_v62 = vsub.s32 5, %v13632_v42  ;;  %v11663_v58 = vld [vmem:[%s14777_s9] ss:$0 sm:$0xff]  ;;  %p13223_p9 = pneg %p13222_p7 }
  0x8a   : > { %12768 = vmatpush3.bf16.msra.mxu0 %v12767_v31  ;;  %12062 = vmatprep.mubr.msk.f32.mxu0 %vm13328_vm0, %v13329_v1  ;;  %v13654_v2 = vsel %vm1499_vm2, %v1495_v63, 0  ;;  %v13663_v5 = vsel %vm1499_vm2, %v1497_v3, 0  ;;  %v3354_v7 = vrot.slane %v3308_v50, %v3353_v59  ;;  %v3360_v9 = vsub.s32 7, %v13632_v42  ;;  %v11665_v59 = vld [vmem:[%s14777_s9 + $0x2] ss:$0 sm:$0xff] }
  0x8b   : > { %12019 = vmatmul.mubr.f32.vlgmr.msra.gmra.mrb[0].mxu1 %v573_v36  ;;  %12769 = vmatprep.subr.bf16.mxu0 %v13327_v0  ;;  %v13660_v4 = vand.u32 4294901760, %v13654_v2  ;;  %v13666_v6 = vand.u32 4294901760, %v13663_v5  ;;  %v3347_v8 = vrot.slane %v3308_v50, %v3346_v62  ;;  %v13334_v11 = vmov 1983009808  }
  0x8c   : > { %12750 = vmatpush3.bf16.msra.mxu1 %v12749_v33  ;;  %12029 = vmatprep.mubr.msk.f32.mxu1 %vm13328_vm0, %v13329_v1  ;;  %v3361_v10 = vrot.slane %v3308_v50, %v3360_v9  ;;  %v13335_v13 = vmov 1934713408   ;;  %vm3459_vm4 = vcmask 56320   ;;  %vm10953_vm13 = vcmask 130048  }
  0x8d   : > { %12751 = vmatprep.subr.bf16.mxu1 %v13327_v0  ;;  %v1030_v14 = vunpack.c.l.s4 %v13335_v13  ;;  %v2488_v62 = vsub.f32 %v13663_v5, %v13666_v6  ;;  %vm10955_vm14 = vcmask 195584  }
  0x8e   : > { %12771 = vmatpush3.bf16.msra.mxu0 %v12770_v37 }
  0x8f   : > { %12772 = vmatprep.subr.bf16.mxu0 %v13327_v0 }
  0x90   : > { %12753 = vmatpush3.bf16.msra.mxu1 %v12752_v38 }
  0x91   : > { %12754 = vmatprep.subr.bf16.mxu1 %v13327_v0  ;;  %12063 = vmatmul.mubr.f32.vlgmr.msra.gmra.mrb[0].mxu0 %v569_v17 }
  0x92   : > { %12774 = vmatpush3.bf16.msra.mxu0 %v12743_v12  ;;  %12073 = vmatprep.mubr.msk.f32.mxu0 %vm13328_vm0, %v13329_v1  ;;  %v998_v12 = vunpack.c.l.s4 %v13334_v11 }
  0x93   : > { %12030 = vmatmul.mubr.f32.vlgmr.msra.gmra.mrb[0].mxu1 %v569_v17  ;;  %12775 = vmatprep.subr.bf16.mxu0 %v13327_v0 }
  0x94   : > { %12756 = vmatpush3.bf16.msra.mxu1 %v12755_v39  ;;  %12040 = vmatprep.mubr.msk.f32.mxu1 %vm13328_vm0, %v13329_v1  ;;  %v999_v15 = vunpack.c.0.s8 %v998_v12  ;;  %v2489_v12 = vand.u32 4294901760, %v2488_v62 }
  0x95   : > { %12757 = vmatprep.subr.bf16.mxu1 %v13327_v0 }
  0x96   : > { %12777 = vmatpush3.bf16.msra.mxu0 %v12746_v18  ;;  %v1031_v18 = vunpack.c.0.s8 %v1030_v14  ;;  %v13680_v19 = vsub.s32 %v999_v15, %v13632_v42 }
  0x97   : > { %12136 = vmatprep.subr.mxu0 %v13329_v1 }
  0x98   : > { %12759 = vmatpush3.bf16.msra.mxu1 %v12758_v40  ;;  %v13695_v25 = vsub.s32 %v1031_v18, %v13632_v42  ;;  %v2490_v18 = vsub.f32 %v2488_v62, %v2489_v12 }
  0x99   : > { %12074 = vmatmul.mubr.f32.vlgmr.msra.gmra.mrb[0].mxu0 %v569_v17  ;;  %12076 = vmatprep.subr.mxu1 %v13329_v1 }
  0x9a   : > { %12138 = vmatprep.mubr.msk.f32.mxu0 %vm13328_vm0, %v13329_v1 }
  0x9b   : > { %12041 = vmatmul.mubr.f32.vlgmr.msra.gmra.mrb[0].mxu1 %v570_v22 }
  0x9c   : > { %12078 = vmatprep.mubr.msk.f32.mxu1 %vm13328_vm0, %v13329_v1 }
  0x9f   : > { %12137 = vmatpush3.xpose.msra.mxu0 %v13666_v6 }
  0xa0   : > { %12141 = vmatprep.subr.mxu0 %v13329_v1 }
  0xa1   : > { %12077 = vmatpush3.xpose.msra.mxu1 %v13660_v4 }
  0xa2   : > { %12081 = vmatprep.subr.mxu1 %v13329_v1 }
 0x16c   : > { %v981_v44 = vpop.f32.mrb[0].mxu0 }
 0x16d   : > { %v12075_v45 = vpop.f32.mrb[1].mxu0 }
 0x16e   : > { %v746_v46 = vpop.f32.mrb[0].mxu1 }
 0x16f   : > { %v12814_v47 = vadd.f32 %v11652_v43, %v746_v46  ;;  %v12042_v48 = vpop.f32.mrb[1].mxu1 }
 0x171   : > { %v13639_v51 = vadd.f32 %v12814_v47, %v981_v44 }
 0x173   : > { %992 = vrot.lane.b32.xlu1 %v13639_v51, %s13330_s1  ;;  %986 = vrot.lane.b32.xlu0 %v13639_v51, %s13331_s19  ;;  %s13340_s1 = smov [#allocation9]  }
 0x174   : > { %s13224_s19 = sshll.u32 %s13340_s1, 4  ;;  %s13225_s19 = int_to_ptr.vmem [resolvable:$false] %s13224_s19 }
 0x175   : > { %p13227_p6 = scmp.lt.s32.totalorder %s14688_s25, %s13225_s19 }
 0x177   : > { %3314 = vbcast.lane.b32.xlu1 %v3312_v52, 256  ;;  %989 = vrot.lane.b32.xlu0 %v13639_v51, %s13332_s23 }
 0x17b   : > { %3328 = vbcast.lane.b32.xlu1 %v3326_v55, 256  ;;  %3321 = vbcast.lane.b32.xlu0 %v3319_v57, 256 }
 0x17f   : > { %3342 = vbcast.lane.b32.xlu1 %v3340_v60, 256  ;;  %3335 = vbcast.lane.b32.xlu0 %v3333_v61, 256  ;;  %v1584_v61 = vsub.f32 %v13654_v2, %v13660_v4 }
 0x181   : > { %v1585_v11 = vand.u32 4294901760, %v1584_v61 }
 0x183   : > { %3356 = vbcast.lane.b32.xlu1 %v3354_v7, 256  ;;  %3349 = vbcast.lane.b32.xlu0 %v3347_v8, 256  ;;  %v1586_v15 = vsub.f32 %v1584_v61, %v1585_v11 }
 0x187   : > { %1135 = vrot.lane.b32.xlu1 %v13639_v51, %s13333_s27  ;;  %3363 = vbcast.lane.b32.xlu0 %v3361_v10, 256 }
 0x1e5   : > { %v13674_v16 = vpop.permute.xlu1 %992  ;;  %v13676_v17 = vpop.permute.xlu0 %986 }
 0x1e6   : > { %1137 = vrot.lane.b32.xlu0 %v13676_v17, %s13333_s27  ;;  %v1011_v20 = vcombine.low %v13676_v17, %v13674_v16  ;;  %v1012_v21 = vcombine.high %v13676_v17, %v13674_v16 }
 0x1e8   : > { %v1019_v26 = vrot.slane %v1011_v20, %v13680_v19  ;;  %v1026_v27 = vrot.slane %v1012_v21, %v13680_v19 }
 0x1e9   : > { %v13686_v22 = vpop.permute.xlu0 %989 }
 0x1ea   : > { %v995_v23 = vcombine.low %v13639_v51, %v13686_v22  ;;  %v996_v24 = vcombine.high %v13639_v51, %v13686_v22  ;;  %1141 = vrot.lane.b32.xlu0 %v13674_v16, %s13333_s27  ;;  %1139 = vrot.lane.b32.xlu1 %v13686_v22, %s13333_s27  ;;  %s13338_s27 = smov 8  }
 0x1ec   : > { %v1003_v28 = vrot.slane %v995_v23, %v13680_v19  ;;  %v1010_v29 = vrot.slane %v996_v24, %v13680_v19 }
 0x1ee   : > { %v1027_v30 = vcombine.low %v1003_v28, %v1019_v26  ;;  %v1028_v31 = vcombine.high %v1003_v28, %v1019_v26  ;;  %v1043_v32 = vcombine.low %v1010_v29, %v1026_v27  ;;  %v1044_v33 = vcombine.high %v1010_v29, %v1026_v27 }
 0x1ef   : > { %v1587_v26 = vand.u32 4294901760, %v1586_v15  ;;  %v2491_v27 = vand.u32 4294901760, %v2490_v18 }
 0x1f0   : > { %v1035_v34 = vrot.slane %v1027_v30, %v13695_v25  ;;  %v1042_v35 = vrot.slane %v1028_v31, %v13695_v25  ;;  %v1051_v36 = vrot.slane %v1043_v32, %v13695_v25  ;;  %v1058_v37 = vrot.slane %v1044_v33, %v13695_v25  ;;  %v11664_v32 = vld [vmem:[%s14777_s9 + $0x1] ss:$0 sm:$0xff]  ;;  %v1496_v33 = vld [vmem:[%s14775_s7 + $0x8] sm:$0x7f] }
 0x1f2   : > { %v1063_v38 = vcombine.low %v1035_v34, %v1042_v35  ;;  %v11653_v39 = vcombine.high %v1035_v34, %v1042_v35  ;;  %v1079_v40 = vcombine.low %v1051_v36, %v1058_v37  ;;  %v11654_v42 = vcombine.high %v1051_v36, %v1058_v37 }
 0x1f3   : > { %v1956_v35 = vsel %vm1499_vm2, %v1496_v33, 0 }
 0x1f4   : > { %v1070_v43 = vrot.slane %v1063_v38, %v13680_v19  ;;  %v1078_v44 = vrot.slane %v11653_v39, %v13680_v19  ;;  %v1086_v45 = vrot.slane %v1079_v40, %v13680_v19  ;;  %v1094_v46 = vrot.slane %v11654_v42, %v13680_v19 }
 0x1f5   : > { %v1959_v37 = vand.u32 4294901760, %v1956_v35 }
 0x1f6   : > { %v1095_v47 = vcombine.low %v1070_v43, %v1078_v44  ;;  %v1096_v48 = vcombine.high %v1070_v43, %v1078_v44  ;;  %v1111_v49 = vcombine.low %v1086_v45, %v1094_v46  ;;  %v1112_v50 = vcombine.high %v1086_v45, %v1094_v46  ;;  %v3315_v45 = vpop.permute.xlu1 %3314 }
 0x1f7   : > { %v2036_v39 = vsub.f32 %v1956_v35, %v1959_v37  ;;  %v13792_v43 = vand.u32 127, %v1000_v41 }
 0x1f8   : > { %v1103_v52 = vrot.slane %v1095_v47, %v13695_v25  ;;  %v13711_v53 = vrot.slane %v1096_v48, %v13695_v25  ;;  %v1119_v54 = vrot.slane %v1111_v49, %v13695_v25  ;;  %v13715_v55 = vrot.slane %v1112_v50, %v13695_v25  ;;  %v11666_v49 = vld [vmem:[%s14777_s9 + $0x3] ss:$0 sm:$0xff]  ;;  %v1498_v50 = vld [vmem:[%s14775_s7 + $0x18] sm:$0x7f] }
 0x1f9   : > { %v2037_v42 = vand.u32 4294901760, %v2036_v39  ;;  %vm3367_vm3 = vcmp.eq.s32.totalorder %v3315_v45, %v13792_v43 }
 0x1fa   : > { %v1127_v56 = vcombine.low %v1103_v52, %v1119_v54  ;;  %v1129_v57 = vcombine.low %v13711_v53, %v13715_v55  ;;  %v1130_v60 = vcombine.high %v13711_v53, %v13715_v55  ;;  %v1128_v30 = vcombine.high %v1103_v52, %v1119_v54 }
 0x1fb   : > { %v2038_v46 = vsub.f32 %v2036_v39, %v2037_v42  ;;  %v13804_v41 = vsel %vm3367_vm3, 1.0, %v13329_v1  ;;  %v2860_v53 = vsel %vm1499_vm2, %v1498_v50, 0 }
 0x1fc   : > { %v13731_v63 = vmul.f32 0.35355338, %v1127_v56  ;;  %v13733_v3 = vmul.f32 0.35355338, %v1129_v57  ;;  %v13759_v31 = vmul.f32 0.35355338, %v1128_v30 }
 0x1fd   : > { %v13824_v48 = vmul.f32 0.35355338, %v1130_v60  ;;  %v2863_v55 = vand.u32 4294901760, %v2860_v53 }
 0x1fe   : > { %v1491_v7 = vadd.f32 %v11663_v58, %v13731_v63  ;;  %v1493_v8 = vadd.f32 %v11665_v59, %v13733_v3  ;;  %v1492_v34 = vadd.f32 %v11664_v32, %v13759_v31 }
 0x1ff   : > { %v1494_v52 = vadd.f32 %v11666_v49, %v13824_v48  ;;  %v2940_v57 = vsub.f32 %v2860_v53, %v2863_v55 }
 0x200   : > { %v1501_v9 = vsel %vm1499_vm2, %v1491_v7, 0  ;;  %v2405_v10 = vsel %vm1499_vm2, %v1493_v8, 0  ;;  %v1953_v36 = vsel %vm1499_vm2, %v1492_v34, 0 }
 0x201   : > { %v13739_v13 = vand.u32 4294901760, %v1501_v9  ;;  %v13741_v2 = vand.u32 4294901760, %v2405_v10  ;;  %v13782_v38 = vand.u32 4294901760, %v1953_v36  ;;  %v2857_v54 = vsel %vm1499_vm2, %v1494_v52, 0 }
 0x202   : > { %v2928_v56 = vand.u32 4294901760, %v2857_v54  ;;  %v2941_v59 = vand.u32 4294901760, %v2940_v57 }
 0x203   : > { %v1573_v5 = vsub.f32 %v1501_v9, %v13739_v13  ;;  %v2477_v14 = vsub.f32 %v2405_v10, %v13741_v2  ;;  %v2025_v40 = vsub.f32 %v1953_v36, %v13782_v38  ;;  %v3322_v9 = vpop.permute.xlu0 %3321 }
 0x204   : > { %v2929_v58 = vsub.f32 %v2857_v54, %v2928_v56  ;;  %vm3368_vm5 = vcmp.eq.s32.totalorder %v3322_v9, %v13792_v43 }
 0x205   : > { %v1574_v20 = vand.u32 4294901760, %v1573_v5  ;;  %v2478_v21 = vand.u32 4294901760, %v2477_v14  ;;  %v2026_v44 = vand.u32 4294901760, %v2025_v40  ;;  %v13866_v10 = vsel %vm3368_vm5, 1.0, %v13329_v1 }
 0x206   : > { %v2930_v60 = vand.u32 4294901760, %v2929_v58  ;;  %v3916_v32 = vsel %vm3459_vm4, %v13866_v10, 0 }
 0x207   : > { %v1575_v23 = vsub.f32 %v1573_v5, %v1574_v20  ;;  %v2479_v24 = vsub.f32 %v2477_v14, %v2478_v21 }
 0x209   : > { %v1576_v28 = vand.u32 4294901760, %v1575_v23  ;;  %v2480_v29 = vand.u32 4294901760, %v2479_v24 }
 0x20b   : > { %12079 = vmatmul.mubr.f32.vlgmr.msra.gmra.mrb[2].mxu1 %v1576_v28  ;;  %12139 = vmatmul.mubr.f32.vlgmr.msra.gmra.mrb[2].mxu0 %v2480_v29 }
 0x20c   : > { %12082 = vmatpush3.xpose.msra.mxu1 %v1587_v26  ;;  %12142 = vmatpush3.xpose.msra.mxu0 %v2491_v27  ;;  %v3464_v26 = vsel %vm3459_vm4, %v13804_v41, 0 }
 0x20d   : > { %12083 = vmatprep.mubr.msk.f32.mxu1 %vm13328_vm0, %v13329_v1  ;;  %12143 = vmatprep.mubr.msk.f32.mxu0 %vm13328_vm0, %v13329_v1 }
 0x20e   : > { %12086 = vmatprep.subr.mxu1 %v13329_v1  ;;  %12146 = vmatprep.subr.mxu0 %v13329_v1 }
 0x213   : > { %12084 = vmatmul.mubr.f32.vlgmr.msra.gmra.mrb[2].mxu1 %v13739_v13  ;;  %12144 = vmatmul.mubr.f32.vlgmr.msra.gmra.mrb[2].mxu0 %v13741_v2 }
 0x214   : > { %12087 = vmatpush3.xpose.msra.mxu1 %v1584_v61  ;;  %12147 = vmatpush3.xpose.msra.mxu0 %v2488_v62  ;;  %v2942_v61 = vsub.f32 %v2940_v57, %v2941_v59  ;;  %v2931_v62 = vsub.f32 %v2929_v58, %v2930_v60 }
 0x215   : > { %12088 = vmatprep.mubr.msk.f32.mxu1 %vm13328_vm0, %v13329_v1  ;;  %12148 = vmatprep.mubr.msk.f32.mxu0 %vm13328_vm0, %v13329_v1 }
 0x216   : > { %12091 = vmatprep.subr.mxu1 %v13329_v1  ;;  %12151 = vmatprep.subr.mxu0 %v13329_v1  ;;  %v2943_v7 = vand.u32 4294901760, %v2942_v61  ;;  %v2932_v8 = vand.u32 4294901760, %v2931_v62  ;;  %v3329_v62 = vpop.permute.xlu1 %3328 }
 0x217   : > { %vm3369_vm6 = vcmp.eq.s32.totalorder %v3329_v62, %v13792_v43 }
 0x218   : > { %v13928_v9 = vsel %vm3369_vm6, 1.0, %v13329_v1 }
 0x21b   : > { %12089 = vmatmul.mubr.f32.vlgmr.msra.gmra.mrb[2].mxu1 %v1573_v5  ;;  %12149 = vmatmul.mubr.f32.vlgmr.msra.gmra.mrb[2].mxu0 %v2477_v14 }
 0x21c   : > { %12092 = vmatpush3.xpose.msra.mxu1 %v13660_v4  ;;  %12152 = vmatpush3.xpose.msra.mxu0 %v13666_v6 }
 0x21d   : > { %12093 = vmatprep.mubr.msk.f32.mxu1 %vm13328_vm0, %v13329_v1  ;;  %12153 = vmatprep.mubr.msk.f32.mxu0 %vm13328_vm0, %v13329_v1 }
 0x21e   : > { %12096 = vmatprep.subr.mxu1 %v13329_v1  ;;  %12156 = vmatprep.subr.mxu0 %v13329_v1 }
 0x223   : > { %12094 = vmatmul.mubr.f32.vlgmr.msra.gmra.mrb[2].mxu1 %v1574_v20  ;;  %12154 = vmatmul.mubr.f32.vlgmr.msra.gmra.mrb[2].mxu0 %v2478_v21 }
 0x224   : > { %12097 = vmatpush3.xpose.msra.mxu1 %v1585_v11  ;;  %12157 = vmatpush3.xpose.msra.mxu0 %v2489_v12 }
 0x225   : > { %12098 = vmatprep.mubr.msk.f32.mxu1 %vm13328_vm0, %v13329_v1  ;;  %12158 = vmatprep.mubr.msk.f32.mxu0 %vm13328_vm0, %v13329_v1 }
 0x226   : > { %12101 = vmatprep.subr.mxu1 %v13329_v1  ;;  %12161 = vmatprep.subr.mxu0 %v13329_v1 }
 0x22b   : > { %12099 = vmatmul.mubr.f32.vlgmr.msra.gmra.mrb[2].mxu1 %v13739_v13  ;;  %12159 = vmatmul.mubr.f32.vlgmr.msra.gmra.mrb[2].mxu0 %v13741_v2 }
 0x22c   : > { %12102 = vmatpush3.xpose.msra.mxu1 %v13660_v4  ;;  %12162 = vmatpush3.xpose.msra.mxu0 %v13666_v6  ;;  %v2027_v4 = vsub.f32 %v2025_v40, %v2026_v44  ;;  %v2039_v6 = vand.u32 4294901760, %v2038_v46 }
 0x22d   : > { %12103 = vmatprep.mubr.msk.f32.mxu1 %vm13328_vm0, %v13329_v1  ;;  %12163 = vmatprep.mubr.msk.f32.mxu0 %vm13328_vm0, %v13329_v1 }
 0x22e   : > { %12106 = vmatprep.subr.mxu1 %v13329_v1  ;;  %12196 = vmatprep.subr.mxu0 %v13329_v1  ;;  %v2028_v47 = vand.u32 4294901760, %v2027_v4 }
 0x233   : > { %12104 = vmatmul.mubr.f32.vlgmr.msra.gmra.mrb[2].mxu1 %v13739_v13  ;;  %12164 = vmatmul.mubr.f32.vlgmr.msra.gmra.mrb[2].mxu0 %v13741_v2 }
 0x234   : > { %12107 = vmatpush3.xpose.msra.mxu1 %v1959_v37  ;;  %12108 = vmatprep.mubr.msk.f32.mxu1 %vm13328_vm0, %v13329_v1 }
 0x235   : > { %12111 = vmatprep.subr.mxu1 %v13329_v1  ;;  %12197 = vmatpush3.xpose.msk.msra.mxu0 %vm3459_vm4, %v13804_v41 }
 0x236   : > { %12198 = vmatprep.mubr.msk.f32.mxu0 %vm13328_vm0, %v13329_v1  ;;  %12201 = vmatprep.subr.mxu0 %v13329_v1 }
 0x237   : > { %12109 = vmatmul.mubr.f32.vlgmr.msra.gmra.mrb[4].mxu1 %v2028_v47 }
 0x238   : > { %12112 = vmatpush3.xpose.msra.mxu1 %v2039_v6  ;;  %12113 = vmatprep.mubr.msk.f32.mxu1 %vm13328_vm0, %v13329_v1 }
 0x239   : > { %12116 = vmatprep.subr.mxu1 %v13329_v1 }
 0x23f   : > { %12114 = vmatmul.mubr.f32.vlgmr.msra.gmra.mrb[4].mxu1 %v13782_v38 }
 0x240   : > { %12117 = vmatpush3.xpose.msra.mxu1 %v2036_v39  ;;  %12118 = vmatprep.mubr.msk.f32.mxu1 %vm13328_vm0, %v13329_v1 }
 0x241   : > { %12121 = vmatprep.subr.mxu1 %v13329_v1 }
 0x247   : > { %12119 = vmatmul.mubr.f32.vlgmr.msra.gmra.mrb[4].mxu1 %v2025_v40 }
 0x248   : > { %12122 = vmatpush3.xpose.msra.mxu1 %v1959_v37  ;;  %12123 = vmatprep.mubr.msk.f32.mxu1 %vm13328_vm0, %v13329_v1 }
 0x249   : > { %12126 = vmatprep.subr.mxu1 %v13329_v1 }
 0x24f   : > { %12124 = vmatmul.mubr.f32.vlgmr.msra.gmra.mrb[4].mxu1 %v2026_v44 }
 0x250   : > { %12127 = vmatpush3.xpose.msra.mxu1 %v2037_v42  ;;  %12128 = vmatprep.mubr.msk.f32.mxu1 %vm13328_vm0, %v13329_v1 }
 0x251   : > { %12131 = vmatprep.subr.mxu1 %v13329_v1 }
 0x257   : > { %12129 = vmatmul.mubr.f32.vlgmr.msra.gmra.mrb[4].mxu1 %v13782_v38 }
 0x258   : > { %12132 = vmatpush3.xpose.msra.mxu1 %v1959_v37  ;;  %12133 = vmatprep.mubr.msk.f32.mxu1 %vm13328_vm0, %v13329_v1  ;;  %v3544_v37 = vsub.f32 %v3464_v26, %v3464_v26 }
 0x259   : > { %12166 = vmatprep.subr.mxu1 %v13329_v1 }
 0x25a   : > { %v3545_v44 = vand.u32 4294901760, %v3544_v37 }
 0x25c   : > { %v3546_v49 = vsub.f32 %v3544_v37, %v3545_v44 }
 0x25f   : > { %12134 = vmatmul.mubr.f32.vlgmr.msra.gmra.mrb[4].mxu1 %v13782_v38  ;;  %v3996_v38 = vsub.f32 %v3916_v32, %v3916_v32 }
 0x260   : > { %12167 = vmatpush3.xpose.msra.mxu1 %v2863_v55  ;;  %12168 = vmatprep.mubr.msk.f32.mxu1 %vm13328_vm0, %v13329_v1 }
 0x261   : > { %12171 = vmatprep.subr.mxu1 %v13329_v1  ;;  %v3997_v4 = vand.u32 4294901760, %v3996_v38 }
 0x263   : > { %12169 = vmatmul.mubr.f32.vlgmr.msra.gmra.mrb[6].mxu1 %v2932_v8  ;;  %v3998_v53 = vsub.f32 %v3996_v38, %v3997_v4 }
 0x264   : > { %12172 = vmatpush3.xpose.msra.mxu1 %v2943_v7  ;;  %12173 = vmatprep.mubr.msk.f32.mxu1 %vm13328_vm0, %v13329_v1  ;;  %v3336_v7 = vpop.permute.xlu0 %3335 }
 0x265   : > { %12176 = vmatprep.subr.mxu1 %v13329_v1  ;;  %vm3370_vm7 = vcmp.eq.s32.totalorder %v3336_v7, %v13792_v43 }
 0x26b   : > { %12174 = vmatmul.mubr.f32.vlgmr.msra.gmra.mrb[6].mxu1 %v2928_v56 }
 0x26c   : > { %12177 = vmatpush3.xpose.msra.mxu1 %v2940_v57  ;;  %12178 = vmatprep.mubr.msk.f32.mxu1 %vm13328_vm0, %v13329_v1 }
 0x26d   : > { %12181 = vmatprep.subr.mxu1 %v13329_v1 }
 0x273   : > { %12179 = vmatmul.mubr.f32.vlgmr.msra.gmra.mrb[6].mxu1 %v2929_v58 }
 0x274   : > { %12182 = vmatpush3.xpose.msra.mxu1 %v2863_v55  ;;  %12183 = vmatprep.mubr.msk.f32.mxu1 %vm13328_vm0, %v13329_v1 }
 0x275   : > { %12186 = vmatprep.subr.mxu1 %v13329_v1 }
 0x27b   : > { %12184 = vmatmul.mubr.f32.vlgmr.msra.gmra.mrb[6].mxu1 %v2930_v60 }
 0x27c   : > { %12187 = vmatpush3.xpose.msra.mxu1 %v2941_v59  ;;  %12188 = vmatprep.mubr.msk.f32.mxu1 %vm13328_vm0, %v13329_v1  ;;  %v3999_v59 = vand.u32 4294901760, %v3998_v53 }
 0x27d   : > { %12191 = vmatprep.subr.mxu1 %v13329_v1 }
 0x283   : > { %12189 = vmatmul.mubr.f32.vlgmr.msra.gmra.mrb[6].mxu1 %v2928_v56 }
 0x284   : > { %12192 = vmatpush3.xpose.msra.mxu1 %v2863_v55  ;;  %12193 = vmatprep.mubr.msk.f32.mxu1 %vm13328_vm0, %v13329_v1 }
 0x285   : > { %12226 = vmatprep.subr.mxu1 %v13329_v1 }
 0x28b   : > { %12194 = vmatmul.mubr.f32.vlgmr.msra.gmra.mrb[6].mxu1 %v2928_v56  ;;  %v3547_v56 = vand.u32 4294901760, %v3546_v49 }
 0x28c   : > { %12227 = vmatpush3.xpose.msk.msra.mxu1 %vm3459_vm4, %v13866_v10  ;;  %12228 = vmatprep.mubr.msk.f32.mxu1 %vm13328_vm0, %v13329_v1 }
 0x28d   : > { %12231 = vmatprep.subr.mxu1 %v13329_v1 }
 0x306   : > { %v1948_v11 = vpop.f32.mrb[2].mxu1  ;;  %v2852_v12 = vpop.f32.mrb[2].mxu0 }
 0x307   : > { %v3391_v13 = vcombine.low %v1948_v11, %v2852_v12  ;;  %v3392_v2 = vcombine.high %v1948_v11, %v2852_v12  ;;  %v12105_v5 = vpop.f32.mrb[3].mxu1  ;;  %v12165_v14 = vpop.f32.mrb[3].mxu0  ;;  %v13932_v12 = vsel %vm3370_vm7, 1.0, %v13329_v1 }
 0x308   : > { %v4820_v14 = vsel %vm3459_vm4, %v13932_v12, 0 }
 0x309   : > { %v3399_v27 = vrot.slane %v3391_v13, %v13680_v19  ;;  %v13877_v28 = vrot.slane %v3392_v2, %v13680_v19  ;;  %v4368_v2 = vsel %vm3459_vm4, %v13928_v9, 0 }
 0x332   : > { %v2400_v15 = vpop.f32.mrb[4].mxu1 }
 0x333   : > { %v12135_v18 = vpop.f32.mrb[5].mxu1 }
 0x334   : > { %v13949_v18 = vsub.f32 %v4368_v2, %v4368_v2 }
 0x35e   : > { %v3304_v20 = vpop.f32.mrb[6].mxu1 }
 0x35f   : > { %v3407_v21 = vcombine.low %v2400_v15, %v3304_v20  ;;  %v3408_v23 = vcombine.high %v2400_v15, %v3304_v20  ;;  %v12195_v24 = vpop.f32.mrb[7].mxu1  ;;  %v13951_v20 = vsub.f32 %v4820_v14, %v4820_v14 }
 0x360   : > { %v4449_v24 = vand.u32 4294901760, %v13949_v18 }
 0x361   : > { %v3415_v29 = vrot.slane %v3407_v21, %v13680_v19  ;;  %v13881_v30 = vrot.slane %v3408_v23, %v13680_v19 }
 0x363   : > { %v3423_v33 = vcombine.low %v3399_v27, %v3415_v29  ;;  %v3424_v34 = vcombine.high %v3399_v27, %v3415_v29  ;;  %v3439_v35 = vcombine.low %v13877_v28, %v13881_v30  ;;  %v3440_v36 = vcombine.high %v13877_v28, %v13881_v30 }
 0x364   : > { %v4901_v27 = vand.u32 4294901760, %v13951_v20  ;;  %v4450_v29 = vsub.f32 %v13949_v18, %v4449_v24 }
 0x365   : > { %v3431_v39 = vrot.slane %v3423_v33, %v13695_v25  ;;  %v3438_v61 = vrot.slane %v3424_v34, %v13695_v25 }
 0x366   : > { %v4902_v32 = vsub.f32 %v13951_v20, %v4901_v27  ;;  %v4451_v34 = vand.u32 4294901760, %v4450_v29 }
 0x367   : > { %v3455_v40 = vcombine.high %v3431_v39, %v13329_v1  ;;  %v3461_v42 = vsel %vm3459_vm4, %v3431_v39, 0  ;;  %v3456_v8 = vcombine.high %v3438_v61, %v13329_v1  ;;  %v4365_v11 = vsel %vm3459_vm4, %v3438_v61, 0 }
 0x368   : > { %v13892_v45 = vand.u32 4294901760, %v3461_v42  ;;  %v13937_v5 = vand.u32 4294901760, %v4365_v11 }
 0x369   : > { %v3913_v46 = vsel %vm3459_vm4, %v3455_v40, 0  ;;  %v4817_v13 = vsel %vm3459_vm4, %v3456_v8, 0  ;;  %v3447_v40 = vrot.slane %v3439_v35, %v13695_v25  ;;  %v3350_v35 = vpop.permute.xlu0 %3349 }
 0x36a   : > { %v13895_v6 = vand.u32 4294901760, %v3913_v46  ;;  %v3533_v47 = vsub.f32 %v3461_v42, %v13892_v45  ;;  %v13943_v15 = vand.u32 4294901760, %v4817_v13  ;;  %v13954_v21 = vsub.f32 %v4365_v11, %v13937_v5  ;;  %v3343_v42 = vpop.permute.xlu1 %3342 }
 0x36b   : > { %vm3371_vm8 = vcmp.eq.s32.totalorder %v3343_v42, %v13792_v43  ;;  %vm3372_vm9 = vcmp.eq.s32.totalorder %v3350_v35, %v13792_v43 }
 0x36c   : > { %v3985_v50 = vsub.f32 %v3913_v46, %v13895_v6  ;;  %v3534_v52 = vand.u32 4294901760, %v3533_v47  ;;  %v13957_v23 = vsub.f32 %v4817_v13, %v13943_v15  ;;  %v4438_v26 = vand.u32 4294901760, %v13954_v21 }
 0x36d   : > { %v5269_v46 = vsel %vm3459_vm4, %v3447_v40, 0  ;;  %v3364_v2 = vpop.permute.xlu0 %3363 }
 0x36e   : > { %v3986_v54 = vand.u32 4294901760, %v3985_v50  ;;  %v3535_v55 = vsub.f32 %v3533_v47, %v3534_v52  ;;  %v14036_v49 = vand.u32 4294901760, %v5269_v46  ;;  %v3357_v14 = vpop.permute.xlu1 %3356  ;;  %vm3374_vm11 = vcmp.eq.s32.totalorder %v3364_v2, %v13792_v43 }
 0x36f   : > { %vm3373_vm10 = vcmp.eq.s32.totalorder %v3357_v14, %v13792_v43 }
 0x370   : > { %v3987_v57 = vsub.f32 %v3985_v50, %v3986_v54  ;;  %v3536_v58 = vand.u32 4294901760, %v3535_v55  ;;  %v14053_v55 = vsub.f32 %v5269_v46, %v14036_v49 }
 0x371   : > { %v1138_v30 = vpop.permute.xlu0 %1137 }
 0x372   : > { %v3988_v60 = vand.u32 4294901760, %v3987_v57  ;;  %12199 = vmatmul.mubr.f32.vlgmr.msra.gmra.mrb[4].mxu0 %v3536_v58  ;;  %v5342_v58 = vand.u32 4294901760, %v14053_v55 }
 0x373   : > { %12202 = vmatpush3.xpose.msra.mxu0 %v3547_v56  ;;  %12203 = vmatprep.mubr.msk.f32.mxu0 %vm13328_vm0, %v13329_v1 }
 0x374   : > { %12229 = vmatmul.mubr.f32.vlgmr.msra.gmra.mrb[8].mxu1 %v3988_v60  ;;  %12206 = vmatprep.subr.mxu0 %v13329_v1  ;;  %v5343_v62 = vsub.f32 %v14053_v55, %v5342_v58 }
 0x375   : > { %12232 = vmatpush3.xpose.msra.mxu1 %v3999_v59  ;;  %12233 = vmatprep.mubr.msk.f32.mxu1 %vm13328_vm0, %v13329_v1 }
 0x376   : > { %12236 = vmatprep.subr.mxu1 %v13329_v1  ;;  %v5344_v11 = vand.u32 4294901760, %v5343_v62 }
 0x37a   : > { %12204 = vmatmul.mubr.f32.vlgmr.msra.gmra.mrb[4].mxu0 %v13892_v45 }
 0x37b   : > { %12207 = vmatpush3.xpose.msra.mxu0 %v3544_v37  ;;  %12208 = vmatprep.mubr.msk.f32.mxu0 %vm13328_vm0, %v13329_v1 }
 0x37c   : > { %12234 = vmatmul.mubr.f32.vlgmr.msra.gmra.mrb[8].mxu1 %v13895_v6  ;;  %12211 = vmatprep.subr.mxu0 %v13329_v1 }
 0x37d   : > { %12237 = vmatpush3.xpose.msra.mxu1 %v3996_v38  ;;  %12238 = vmatprep.mubr.msk.f32.mxu1 %vm13328_vm0, %v13329_v1  ;;  %v4903_v38 = vand.u32 4294901760, %v4902_v32 }
 0x37e   : > { %12241 = vmatprep.subr.mxu1 %v13329_v1 }
 0x382   : > { %12209 = vmatmul.mubr.f32.vlgmr.msra.gmra.mrb[4].mxu0 %v3533_v47 }
 0x383   : > { %12212 = vmatpush3.xpose.msk.msra.mxu0 %vm3459_vm4, %v13804_v41  ;;  %12213 = vmatprep.mubr.msk.f32.mxu0 %vm13328_vm0, %v13329_v1 }
 0x384   : > { %12239 = vmatmul.mubr.f32.vlgmr.msra.gmra.mrb[8].mxu1 %v3985_v50  ;;  %12216 = vmatprep.subr.mxu0 %v13329_v1 }
 0x385   : > { %12242 = vmatpush3.xpose.msk.msra.mxu1 %vm3459_vm4, %v13866_v10  ;;  %12243 = vmatprep.mubr.msk.f32.mxu1 %vm13328_vm0, %v13329_v1 }
 0x386   : > { %12246 = vmatprep.subr.mxu1 %v13329_v1 }
 0x38a   : > { %12214 = vmatmul.mubr.f32.vlgmr.msra.gmra.mrb[4].mxu0 %v3534_v52 }
 0x38b   : > { %12217 = vmatpush3.xpose.msra.mxu0 %v3545_v44  ;;  %12218 = vmatprep.mubr.msk.f32.mxu0 %vm13328_vm0, %v13329_v1  ;;  %v3457_v44 = vcombine.high %v3447_v40, %v13329_v1 }
 0x38c   : > { %12244 = vmatmul.mubr.f32.vlgmr.msra.gmra.mrb[8].mxu1 %v3986_v54  ;;  %12221 = vmatprep.subr.mxu0 %v13329_v1 }
 0x38d   : > { %12247 = vmatpush3.xpose.msra.mxu1 %v3997_v4  ;;  %12248 = vmatprep.mubr.msk.f32.mxu1 %vm13328_vm0, %v13329_v1  ;;  %v14031_v4 = vsel %vm3372_vm9, 1.0, %v13329_v1 }
 0x38e   : > { %12251 = vmatprep.subr.mxu1 %v13329_v1  ;;  %v5724_v50 = vsel %vm3459_vm4, %v14031_v4, 0 }
 0x38f   : > { %v14050_v54 = vsub.f32 %v5724_v50, %v5724_v50 }
 0x391   : > { %v5805_v59 = vand.u32 4294901760, %v14050_v54 }
 0x392   : > { %12219 = vmatmul.mubr.f32.vlgmr.msra.gmra.mrb[4].mxu0 %v13892_v45 }
 0x393   : > { %12222 = vmatpush3.xpose.msk.msra.mxu0 %vm3459_vm4, %v13804_v41  ;;  %12223 = vmatprep.mubr.msk.f32.mxu0 %vm13328_vm0, %v13329_v1  ;;  %v4890_v41 = vand.u32 4294901760, %v13957_v23  ;;  %v5806_v7 = vsub.f32 %v14050_v54, %v5805_v59 }
 0x394   : > { %12249 = vmatmul.mubr.f32.vlgmr.msra.gmra.mrb[8].mxu1 %v13895_v6  ;;  %12256 = vmatprep.subr.mxu0 %v13329_v1 }
 0x395   : > { %12252 = vmatpush3.xpose.msk.msra.mxu1 %vm3459_vm4, %v13866_v10  ;;  %12253 = vmatprep.mubr.msk.f32.mxu1 %vm13328_vm0, %v13329_v1  ;;  %v4439_v10 = vsub.f32 %v13954_v21, %v4438_v26  ;;  %v4891_v33 = vsub.f32 %v13957_v23, %v4890_v41 }
 0x396   : > { %12286 = vmatprep.subr.mxu1 %v13329_v1 }
 0x397   : > { %v4440_v37 = vand.u32 4294901760, %v4439_v10  ;;  %v4892_v39 = vand.u32 4294901760, %v4891_v33 }
 0x39a   : > { %12224 = vmatmul.mubr.f32.vlgmr.msra.gmra.mrb[4].mxu0 %v13892_v45  ;;  %v14027_v45 = vsel %vm3371_vm8, 1.0, %v13329_v1 }
 0x39b   : > { %12257 = vmatpush3.xpose.msk.msra.mxu0 %vm3459_vm4, %v13928_v9  ;;  %12258 = vmatprep.mubr.msk.f32.mxu0 %vm13328_vm0, %v13329_v1  ;;  %v5272_v47 = vsel %vm3459_vm4, %v14027_v45, 0 }
 0x39c   : > { %12254 = vmatmul.mubr.f32.vlgmr.msra.gmra.mrb[8].mxu1 %v13895_v6  ;;  %12261 = vmatprep.subr.mxu0 %v13329_v1  ;;  %v5721_v6 = vsel %vm3459_vm4, %v3457_v44, 0  ;;  %v14048_v53 = vsub.f32 %v5272_v47, %v5272_v47 }
 0x39d   : > { %12287 = vmatpush3.xpose.msk.msra.mxu1 %vm3459_vm4, %v13932_v12  ;;  %12288 = vmatprep.mubr.msk.f32.mxu1 %vm13328_vm0, %v13329_v1  ;;  %v14042_v52 = vand.u32 4294901760, %v5721_v6 }
 0x39e   : > { %12259 = vmatmul.mubr.f32.vlgmr.msra.gmra.mrb[6].mxu0 %v4440_v37  ;;  %12291 = vmatprep.subr.mxu1 %v13329_v1  ;;  %v5353_v57 = vand.u32 4294901760, %v14048_v53 }
 0x39f   : > { %12262 = vmatpush3.xpose.msra.mxu0 %v4451_v34  ;;  %12263 = vmatprep.mubr.msk.f32.mxu0 %vm13328_vm0, %v13329_v1  ;;  %v14056_v56 = vsub.f32 %v5721_v6, %v14042_v52 }
 0x3a0   : > { %12289 = vmatmul.mubr.f32.vlgmr.msra.gmra.mrb[10].mxu1 %v4892_v39  ;;  %12266 = vmatprep.subr.mxu0 %v13329_v1  ;;  %v5354_v61 = vsub.f32 %v14048_v53, %v5353_v57 }
 0x3a1   : > { %12292 = vmatpush3.xpose.msra.mxu1 %v4903_v38  ;;  %12293 = vmatprep.mubr.msk.f32.mxu1 %vm13328_vm0, %v13329_v1  ;;  %v5794_v60 = vand.u32 4294901760, %v14056_v56 }
 0x3a2   : > { %12296 = vmatprep.subr.mxu1 %v13329_v1 }
 0x3a3   : > { %v5795_v8 = vsub.f32 %v14056_v56, %v5794_v60 }
 0x3a5   : > { %v5796_v13 = vand.u32 4294901760, %v5795_v8 }
 0x3a6   : > { %12264 = vmatmul.mubr.f32.vlgmr.msra.gmra.mrb[6].mxu0 %v13937_v5 }
 0x3a7   : > { %12267 = vmatpush3.xpose.msra.mxu0 %v13949_v18  ;;  %12268 = vmatprep.mubr.msk.f32.mxu0 %vm13328_vm0, %v13329_v1  ;;  %v1136_v18 = vpop.permute.xlu1 %1135 }
 0x3a8   : > { %12294 = vmatmul.mubr.f32.vlgmr.msra.gmra.mrb[10].mxu1 %v13943_v15  ;;  %12271 = vmatprep.subr.mxu0 %v13329_v1 }
 0x3a9   : > { %12297 = vmatpush3.xpose.msra.mxu1 %v13951_v20  ;;  %12298 = vmatprep.mubr.msk.f32.mxu1 %vm13328_vm0, %v13329_v1  ;;  %v14130_v20 = vsel %vm3374_vm11, 1.0, %v13329_v1 }
 0x3aa   : > { %12301 = vmatprep.subr.mxu1 %v13329_v1  ;;  %v6628_v43 = vsel %vm3459_vm4, %v14130_v20, 0 }
 0x3ab   : > { %v14149_v10 = vsub.f32 %v6628_v43, %v6628_v43  ;;  %v11660_v43 = vld [vmem:[%s14776_s8 + $0x1] ss:$0 sm:$0xff] }
 0x3ad   : > { %v6709_v35 = vand.u32 4294901760, %v14149_v10 }
 0x3ae   : > { %12269 = vmatmul.mubr.f32.vlgmr.msra.gmra.mrb[6].mxu0 %v13954_v21 }
 0x3af   : > { %12272 = vmatpush3.xpose.msk.msra.mxu0 %vm3459_vm4, %v13928_v9  ;;  %12273 = vmatprep.mubr.msk.f32.mxu0 %vm13328_vm0, %v13329_v1 }
 0x3b0   : > { %12299 = vmatmul.mubr.f32.vlgmr.msra.gmra.mrb[10].mxu1 %v13957_v23  ;;  %12276 = vmatprep.subr.mxu0 %v13329_v1 }
 0x3b1   : > { %12302 = vmatpush3.xpose.msk.msra.mxu1 %vm3459_vm4, %v13932_v12  ;;  %12303 = vmatprep.mubr.msk.f32.mxu1 %vm13328_vm0, %v13329_v1 }
 0x3b2   : > { %12306 = vmatprep.subr.mxu1 %v13329_v1 }
 0x3b6   : > { %12274 = vmatmul.mubr.f32.vlgmr.msra.gmra.mrb[6].mxu0 %v4438_v26 }
 0x3b7   : > { %12277 = vmatpush3.xpose.msra.mxu0 %v4449_v24  ;;  %12278 = vmatprep.mubr.msk.f32.mxu0 %vm13328_vm0, %v13329_v1 }
 0x3b8   : > { %12304 = vmatmul.mubr.f32.vlgmr.msra.gmra.mrb[10].mxu1 %v4890_v41  ;;  %12281 = vmatprep.subr.mxu0 %v13329_v1  ;;  %v1142_v41 = vpop.permute.xlu0 %1141 }
 0x3b9   : > { %12307 = vmatpush3.xpose.msra.mxu1 %v4901_v27  ;;  %12308 = vmatprep.mubr.msk.f32.mxu1 %vm13328_vm0, %v13329_v1  ;;  %v1140_v27 = vpop.permute.xlu1 %1139  ;;  %v1163_v34 = vcombine.low %v1138_v30, %v1142_v41  ;;  %v1164_v39 = vcombine.high %v1138_v30, %v1142_v41 }
 0x3ba   : > { %12311 = vmatprep.subr.mxu1 %v13329_v1  ;;  %v1147_v33 = vcombine.low %v1136_v18, %v1140_v27  ;;  %v1148_v38 = vcombine.high %v1136_v18, %v1140_v27 }
 0x3bb   : > { %v1171_v46 = vrot.slane %v1163_v34, %v13680_v19  ;;  %v1178_v6 = vrot.slane %v1164_v39, %v13680_v19 }
 0x3bc   : > { %v1155_v44 = vrot.slane %v1147_v33, %v13680_v19  ;;  %v1464_v33 = vadd.f32 %v11660_v43, %v13759_v31 }
 0x3be   : > { %12279 = vmatmul.mubr.f32.vlgmr.msra.gmra.mrb[6].mxu0 %v13937_v5 }
 0x3bf   : > { %12282 = vmatpush3.xpose.msk.msra.mxu0 %vm3459_vm4, %v13928_v9  ;;  %12283 = vmatprep.mubr.msk.f32.mxu0 %vm13328_vm0, %v13329_v1  ;;  %v5355_v9 = vand.u32 4294901760, %v5354_v61 }
 0x3c0   : > { %12309 = vmatmul.mubr.f32.vlgmr.msra.gmra.mrb[10].mxu1 %v13943_v15  ;;  %12316 = vmatprep.subr.mxu0 %v13329_v1 }
 0x3c1   : > { %12312 = vmatpush3.xpose.msk.msra.mxu1 %vm3459_vm4, %v13932_v12  ;;  %12313 = vmatprep.mubr.msk.f32.mxu1 %vm13328_vm0, %v13329_v1  ;;  %v5807_v12 = vand.u32 4294901760, %v5806_v7 }
 0x3c2   : > { %12346 = vmatprep.subr.mxu1 %v13329_v1 }
 0x3c6   : > { %12284 = vmatmul.mubr.f32.vlgmr.msra.gmra.mrb[6].mxu0 %v13937_v5  ;;  %v3454_v5 = vrot.slane %v3440_v36, %v13695_v25  ;;  %v14126_v36 = vsel %vm3373_vm10, 1.0, %v13329_v1 }
 0x3c7   : > { %12317 = vmatpush3.xpose.msk.msra.mxu0 %vm3459_vm4, %v14027_v45  ;;  %12318 = vmatprep.mubr.msk.f32.mxu0 %vm13328_vm0, %v13329_v1  ;;  %v6176_v23 = vsel %vm3459_vm4, %v14126_v36, 0 }
 0x3c8   : > { %12314 = vmatmul.mubr.f32.vlgmr.msra.gmra.mrb[10].mxu1 %v13943_v15  ;;  %12321 = vmatprep.subr.mxu0 %v13329_v1  ;;  %v3458_v28 = vcombine.high %v3454_v5, %v13329_v1  ;;  %v6173_v15 = vsel %vm3459_vm4, %v3454_v5, 0  ;;  %v14147_v29 = vsub.f32 %v6176_v23, %v6176_v23  ;;  %v11659_v23 = vld [vmem:[%s14776_s8] ss:$0 sm:$0xff] }
 0x3c9   : > { %12347 = vmatpush3.xpose.msk.msra.mxu1 %vm3459_vm4, %v14031_v4  ;;  %12348 = vmatprep.mubr.msk.f32.mxu1 %vm13328_vm0, %v13329_v1  ;;  %v14135_v24 = vand.u32 4294901760, %v6173_v15  ;;  %v1463_v27 = vadd.f32 %v11659_v23, %v13731_v63 }
 0x3ca   : > { %12319 = vmatmul.mubr.f32.vlgmr.msra.gmra.mrb[8].mxu0 %v5344_v11  ;;  %12351 = vmatprep.subr.mxu1 %v13329_v1  ;;  %v6625_v21 = vsel %vm3459_vm4, %v3458_v28, 0  ;;  %v6257_v40 = vand.u32 4294901760, %v14147_v29 }
 0x3cb   : > { %12322 = vmatpush3.xpose.msra.mxu0 %v5355_v9  ;;  %12323 = vmatprep.mubr.msk.f32.mxu0 %vm13328_vm0, %v13329_v1  ;;  %v14141_v26 = vand.u32 4294901760, %v6625_v21  ;;  %v14152_v32 = vsub.f32 %v6173_v15, %v14135_v24 }
 0x3cc   : > { %12349 = vmatmul.mubr.f32.vlgmr.msra.gmra.mrb[12].mxu1 %v5796_v13  ;;  %12326 = vmatprep.subr.mxu0 %v13329_v1  ;;  %v6258_v47 = vsub.f32 %v14147_v29, %v6257_v40 }
 0x3cd   : > { %12352 = vmatpush3.xpose.msra.mxu1 %v5807_v12  ;;  %12353 = vmatprep.mubr.msk.f32.mxu1 %vm13328_vm0, %v13329_v1  ;;  %v14155_v37 = vsub.f32 %v6625_v21, %v14141_v26  ;;  %v6246_v42 = vand.u32 4294901760, %v14152_v32 }
 0x3ce   : > { %12356 = vmatprep.subr.mxu1 %v13329_v1 }
 0x3cf   : > { %v6247_v50 = vsub.f32 %v14152_v32, %v6246_v42 }
 0x3d2   : > { %12324 = vmatmul.mubr.f32.vlgmr.msra.gmra.mrb[8].mxu0 %v14036_v49 }
 0x3d3   : > { %12327 = vmatpush3.xpose.msra.mxu0 %v14048_v53  ;;  %12328 = vmatprep.mubr.msk.f32.mxu0 %vm13328_vm0, %v13329_v1  ;;  %v6710_v53 = vsub.f32 %v14149_v10, %v6709_v35 }
 0x3d4   : > { %12354 = vmatmul.mubr.f32.vlgmr.msra.gmra.mrb[12].mxu1 %v14042_v52  ;;  %12331 = vmatprep.subr.mxu0 %v13329_v1 }
 0x3d5   : > { %12357 = vmatpush3.xpose.msra.mxu1 %v14050_v54  ;;  %12358 = vmatprep.mubr.msk.f32.mxu1 %vm13328_vm0, %v13329_v1  ;;  %v1179_v54 = vcombine.low %v1155_v44, %v1171_v46  ;;  %v6711_v61 = vand.u32 4294901760, %v6710_v53 }
 0x3d6   : > { %12361 = vmatprep.subr.mxu1 %v13329_v1 }
 0x3d7   : > { %v1187_v62 = vrot.slane %v1179_v54, %v13695_v25 }
 0x3da   : > { %12329 = vmatmul.mubr.f32.vlgmr.msra.gmra.mrb[8].mxu0 %v14053_v55 }
 0x3db   : > { %12332 = vmatpush3.xpose.msk.msra.mxu0 %vm3459_vm4, %v14027_v45  ;;  %12333 = vmatprep.mubr.msk.f32.mxu0 %vm13328_vm0, %v13329_v1 }
 0x3dc   : > { %12359 = vmatmul.mubr.f32.vlgmr.msra.gmra.mrb[12].mxu1 %v14056_v56  ;;  %12336 = vmatprep.subr.mxu0 %v13329_v1  ;;  %v1180_v56 = vcombine.high %v1155_v44, %v1171_v46  ;;  %v7597_v44 = vsel %vm1499_vm2, %v1464_v33, 0 }
 0x3dd   : > { %12362 = vmatpush3.xpose.msk.msra.mxu1 %vm3459_vm4, %v14031_v4  ;;  %12363 = vmatprep.mubr.msk.f32.mxu1 %vm13328_vm0, %v13329_v1 }
 0x3de   : > { %12366 = vmatprep.subr.mxu1 %v13329_v1  ;;  %v1194_v7 = vrot.slane %v1180_v56, %v13695_v25 }
 0x3e0   : > { %v1215_v9 = vcombine.low %v1187_v62, %v1194_v7  ;;  %v11655_v11 = vcombine.high %v1187_v62, %v1194_v7 }
 0x3e2   : > { %12334 = vmatmul.mubr.f32.vlgmr.msra.gmra.mrb[8].mxu0 %v5342_v58  ;;  %v14212_v2 = vrot.slane %v1215_v9, %v13680_v19  ;;  %v14215_v5 = vrot.slane %v11655_v11, %v13680_v19 }
 0x3e3   : > { %12337 = vmatpush3.xpose.msra.mxu0 %v5353_v57  ;;  %12338 = vmatprep.mubr.msk.f32.mxu0 %vm13328_vm0, %v13329_v1 }
 0x3e4   : > { %12364 = vmatmul.mubr.f32.vlgmr.msra.gmra.mrb[12].mxu1 %v5794_v60  ;;  %12341 = vmatprep.subr.mxu0 %v13329_v1  ;;  %v6248_v60 = vand.u32 4294901760, %v6247_v50  ;;  %v1247_v30 = vcombine.low %v14212_v2, %v14215_v5 }
 0x3e5   : > { %12367 = vmatpush3.xpose.msra.mxu1 %v5805_v59  ;;  %12368 = vmatprep.mubr.msk.f32.mxu1 %vm13328_vm0, %v13329_v1  ;;  %v6259_v59 = vand.u32 4294901760, %v6258_v47 }
 0x3e6   : > { %12371 = vmatprep.subr.mxu1 %v13329_v1  ;;  %v1255_v18 = vrot.slane %v1247_v30, %v13695_v25 }
 0x3ea   : > { %12339 = vmatmul.mubr.f32.vlgmr.msra.gmra.mrb[8].mxu0 %v14036_v49 }
 0x3eb   : > { %12342 = vmatpush3.xpose.msk.msra.mxu0 %vm3459_vm4, %v14027_v45  ;;  %12343 = vmatprep.mubr.msk.f32.mxu0 %vm13328_vm0, %v13329_v1  ;;  %v6698_v45 = vand.u32 4294901760, %v14155_v37 }
 0x3ec   : > { %12369 = vmatmul.mubr.f32.vlgmr.msra.gmra.mrb[12].mxu1 %v14042_v52  ;;  %12376 = vmatprep.subr.mxu0 %v13329_v1 }
 0x3ed   : > { %12372 = vmatpush3.xpose.msk.msra.mxu1 %vm3459_vm4, %v14031_v4  ;;  %12373 = vmatprep.mubr.msk.f32.mxu1 %vm13328_vm0, %v13329_v1  ;;  %v1162_v4 = vrot.slane %v1148_v38, %v13680_v19  ;;  %v6699_v55 = vsub.f32 %v14155_v37, %v6698_v45  ;;  %v7145_v38 = vsel %vm1499_vm2, %v1463_v27, 0 }
 0x3ee   : > { %12406 = vmatprep.subr.mxu1 %v13329_v1  ;;  %v14273_v31 = vand.u32 4294901760, %v7145_v38 }
 0x3ef   : > { %v1195_v57 = vcombine.low %v1162_v4, %v1178_v6  ;;  %v1196_v58 = vcombine.high %v1162_v4, %v1178_v6 }
 0x3f1   : > { %v1210_v8 = vrot.slane %v1196_v58, %v13695_v25 }
 0x3f2   : > { %12344 = vmatmul.mubr.f32.vlgmr.msra.gmra.mrb[8].mxu0 %v14036_v49  ;;  %v6700_v49 = vand.u32 4294901760, %v6699_v55 }
 0x3f3   : > { %12377 = vmatpush3.xpose.msk.msra.mxu0 %vm3459_vm4, %v14126_v36  ;;  %12378 = vmatprep.mubr.msk.f32.mxu0 %vm13328_vm0, %v13329_v1 }
 0x3f4   : > { %12374 = vmatmul.mubr.f32.vlgmr.msra.gmra.mrb[12].mxu1 %v14042_v52  ;;  %12381 = vmatprep.subr.mxu0 %v13329_v1  ;;  %v1203_v52 = vrot.slane %v1195_v57, %v13695_v25 }
 0x3f5   : > { %12407 = vmatpush3.xpose.msk.msra.mxu1 %vm3459_vm4, %v14130_v20  ;;  %12408 = vmatprep.mubr.msk.f32.mxu1 %vm13328_vm0, %v13329_v1 }
 0x3f6   : > { %12379 = vmatmul.mubr.f32.vlgmr.msra.gmra.mrb[10].mxu0 %v6248_v60  ;;  %12411 = vmatprep.subr.mxu1 %v13329_v1  ;;  %v1231_v12 = vcombine.low %v1203_v52, %v1210_v8  ;;  %v11656_v13 = vcombine.high %v1203_v52, %v1210_v8  ;;  %v11662_v60 = vld [vmem:[%s14776_s8 + $0x3] ss:$0 sm:$0xff] }
 0x3f7   : > { %12382 = vmatpush3.xpose.msra.mxu0 %v6259_v59  ;;  %12383 = vmatprep.mubr.msk.f32.mxu0 %vm13328_vm0, %v13329_v1  ;;  %v11661_v59 = vld [vmem:[%s14776_s8 + $0x2] ss:$0 sm:$0xff] }
 0x3f8   : > { %12409 = vmatmul.mubr.f32.vlgmr.msra.gmra.mrb[14].mxu1 %v6700_v49  ;;  %12386 = vmatprep.subr.mxu0 %v13329_v1  ;;  %v14218_v14 = vrot.slane %v1231_v12, %v13680_v19  ;;  %v14221_v28 = vrot.slane %v11656_v13, %v13680_v19  ;;  %v1466_v49 = vadd.f32 %v11662_v60, %v13824_v48 }
 0x3f9   : > { %12412 = vmatpush3.xpose.msra.mxu1 %v6711_v61  ;;  %12413 = vmatprep.mubr.msk.f32.mxu1 %vm13328_vm0, %v13329_v1  ;;  %v1465_v61 = vadd.f32 %v11661_v59, %v13733_v3 }
 0x3fa   : > { %12416 = vmatprep.subr.mxu1 %v13329_v1  ;;  %v1263_v15 = vcombine.low %v14218_v14, %v14221_v28  ;;  %v1264_v56 = vcombine.high %v14218_v14, %v14221_v28  ;;  %v8501_v9 = vsel %vm1499_vm2, %v1466_v49, 0 }
 0x3fb   : > { %v8049_v52 = vsel %vm1499_vm2, %v1465_v61, 0  ;;  %v14380_v12 = vand.u32 4294901760, %v8501_v9 }
 0x3fc   : > { %v1271_v21 = vrot.slane %v1263_v15, %v13695_v25  ;;  %v1278_v58 = vrot.slane %v1264_v56, %v13695_v25  ;;  %v14373_v3 = vand.u32 4294901760, %v8049_v52 }
 0x3fd   : > { %v8573_v14 = vsub.f32 %v8501_v9, %v14380_v12 }
 0x3fe   : > { %12384 = vmatmul.mubr.f32.vlgmr.msra.gmra.mrb[10].mxu0 %v14135_v24  ;;  %v1279_v41 = vcombine.low %v1255_v18, %v1271_v21  ;;  %v1280_v34 = vcombine.high %v1255_v18, %v1271_v21 }
 0x3ff   : > { %12387 = vmatpush3.xpose.msra.mxu0 %v14147_v29  ;;  %12388 = vmatprep.mubr.msk.f32.mxu0 %vm13328_vm0, %v13329_v1  ;;  %v8574_v18 = vand.u32 4294901760, %v8573_v14 }
 0x400   : > { %12414 = vmatmul.mubr.f32.vlgmr.msra.gmra.mrb[14].mxu1 %v14141_v26  ;;  %12391 = vmatprep.subr.mxu0 %v13329_v1  ;;  %v7148_v39 = vsel %vm1499_vm2, %v1279_v41, 0  ;;  %v7600_v63 = vsel %vm1499_vm2, %v1280_v34, 0 }
 0x401   : > { %12417 = vmatpush3.xpose.msra.mxu1 %v14149_v10  ;;  %12418 = vmatprep.mubr.msk.f32.mxu1 %vm13328_vm0, %v13329_v1  ;;  %v14278_v29 = vand.u32 4294901760, %v7148_v39  ;;  %v14286_v10 = vsub.f32 %v7145_v38, %v14273_v31  ;;  %v8575_v27 = vsub.f32 %v8573_v14, %v8574_v18 }
 0x402   : > { %12421 = vmatprep.subr.mxu1 %v13329_v1 }
 0x403   : > { %v7218_v46 = vand.u32 4294901760, %v14286_v10  ;;  %v8576_v38 = vand.u32 4294901760, %v8575_v27 }
 0x406   : > { %12389 = vmatmul.mubr.f32.vlgmr.msra.gmra.mrb[10].mxu0 %v14152_v32  ;;  %v14280_v32 = vand.u32 4294901760, %v7597_v44 }
 0x407   : > { %12392 = vmatpush3.xpose.msk.msra.mxu0 %vm3459_vm4, %v14126_v36  ;;  %12393 = vmatprep.mubr.msk.f32.mxu0 %vm13328_vm0, %v13329_v1 }
 0x408   : > { %12419 = vmatmul.mubr.f32.vlgmr.msra.gmra.mrb[14].mxu1 %v14155_v37  ;;  %12396 = vmatprep.subr.mxu0 %v13329_v1  ;;  %v14283_v37 = vand.u32 4294901760, %v7600_v63 }
 0x409   : > { %12422 = vmatpush3.xpose.msk.msra.mxu1 %vm3459_vm4, %v14130_v20  ;;  %12423 = vmatprep.mubr.msk.f32.mxu1 %vm13328_vm0, %v13329_v1 }
 0x40a   : > { %12426 = vmatprep.subr.mxu1 %v13329_v1 }
 0x40e   : > { %12394 = vmatmul.mubr.f32.vlgmr.msra.gmra.mrb[10].mxu0 %v6246_v42  ;;  %v14292_v42 = vsub.f32 %v7597_v44, %v14280_v32 }
 0x40f   : > { %12397 = vmatpush3.xpose.msra.mxu0 %v6257_v40  ;;  %12398 = vmatprep.mubr.msk.f32.mxu0 %vm13328_vm0, %v13329_v1  ;;  %v14289_v40 = vsub.f32 %v7148_v39, %v14278_v29 }
 0x410   : > { %12424 = vmatmul.mubr.f32.vlgmr.msra.gmra.mrb[14].mxu1 %v6698_v45  ;;  %12401 = vmatprep.subr.mxu0 %v13329_v1  ;;  %v7670_v4 = vand.u32 4294901760, %v14292_v42 }
 0x411   : > { %12427 = vmatpush3.xpose.msra.mxu1 %v6709_v35  ;;  %12428 = vmatprep.mubr.msk.f32.mxu1 %vm13328_vm0, %v13329_v1  ;;  %v14296_v35 = vsub.f32 %v7600_v63, %v14283_v37  ;;  %v7229_v45 = vand.u32 4294901760, %v14289_v40 }
 0x412   : > { %12431 = vmatprep.subr.mxu1 %v13329_v1  ;;  %v7671_v47 = vsub.f32 %v14292_v42, %v7670_v4 }
 0x413   : > { %v7230_v6 = vsub.f32 %v14289_v40, %v7229_v45 }
 0x414   : > { %v7672_v55 = vand.u32 4294901760, %v7671_v47 }
 0x415   : > { %v7231_v54 = vand.u32 4294901760, %v7230_v6 }
 0x416   : > { %12399 = vmatmul.mubr.f32.vlgmr.msra.gmra.mrb[10].mxu0 %v14135_v24 }
 0x417   : > { %12402 = vmatpush3.xpose.msk.msra.mxu0 %vm3459_vm4, %v14126_v36  ;;  %12403 = vmatprep.mubr.msk.f32.mxu0 %vm13328_vm0, %v13329_v1  ;;  %v7681_v36 = vand.u32 4294901760, %v14296_v35 }
 0x418   : > { %12429 = vmatmul.mubr.f32.vlgmr.msra.gmra.mrb[14].mxu1 %v14141_v26  ;;  %12436 = vmatprep.subr.mxu0 %v13329_v1 }
 0x419   : > { %12432 = vmatpush3.xpose.msk.msra.mxu1 %vm3459_vm4, %v14130_v20  ;;  %12433 = vmatprep.mubr.msk.f32.mxu1 %vm13328_vm0, %v13329_v1  ;;  %v7219_v20 = vsub.f32 %v14286_v10, %v7218_v46  ;;  %v7682_v50 = vsub.f32 %v14296_v35, %v7681_v36 }
 0x41a   : > { %12466 = vmatprep.subr.mxu1 %v13329_v1 }
 0x41b   : > { %v7220_v53 = vand.u32 4294901760, %v7219_v20 }
 0x41e   : > { %12404 = vmatmul.mubr.f32.vlgmr.msra.gmra.mrb[10].mxu0 %v14135_v24  ;;  %v7683_v24 = vand.u32 4294901760, %v7682_v50 }
 0x41f   : > { %12437 = vmatpush3.xpose.msra.mxu0 %v14278_v29  ;;  %12438 = vmatprep.mubr.msk.f32.mxu0 %vm13328_vm0, %v13329_v1 }
 0x420   : > { %12434 = vmatmul.mubr.f32.vlgmr.msra.gmra.mrb[14].mxu1 %v14141_v26  ;;  %12441 = vmatprep.subr.mxu0 %v13329_v1  ;;  %v1248_v26 = vcombine.high %v14212_v2, %v14215_v5  ;;  %v8121_v2 = vsub.f32 %v8049_v52, %v14373_v3 }
 0x421   : > { %12467 = vmatpush3.xpose.msra.mxu1 %v14283_v37  ;;  %12468 = vmatprep.mubr.msk.f32.mxu1 %vm13328_vm0, %v13329_v1 }
 0x422   : > { %12439 = vmatmul.mubr.f32.vlgmr.msra.gmra.mrb[12].mxu0 %v7220_v53  ;;  %12471 = vmatprep.subr.mxu1 %v13329_v1  ;;  %v1262_v57 = vrot.slane %v1248_v26, %v13695_v25  ;;  %v8122_v30 = vand.u32 4294901760, %v8121_v2 }
 0x423   : > { %12442 = vmatpush3.xpose.msra.mxu0 %v7231_v54  ;;  %12443 = vmatprep.mubr.msk.f32.mxu0 %vm13328_vm0, %v13329_v1 }
 0x424   : > { %12469 = vmatmul.mubr.f32.vlgmr.msra.gmra.mrb[16].mxu1 %v7672_v55  ;;  %12446 = vmatprep.subr.mxu0 %v13329_v1  ;;  %v1281_v62 = vcombine.low %v1262_v57, %v1278_v58  ;;  %v1282_v7 = vcombine.high %v1262_v57, %v1278_v58  ;;  %v8123_v23 = vsub.f32 %v8121_v2, %v8122_v30 }
 0x425   : > { %12472 = vmatpush3.xpose.msra.mxu1 %v7683_v24  ;;  %12473 = vmatprep.mubr.msk.f32.mxu1 %vm13328_vm0, %v13329_v1 }
 0x426   : > { %12476 = vmatprep.subr.mxu1 %v13329_v1  ;;  %v8052_v8 = vsel %vm1499_vm2, %v1281_v62, 0  ;;  %v8504_v11 = vsel %vm1499_vm2, %v1282_v7, 0  ;;  %v8124_v33 = vand.u32 4294901760, %v8123_v23 }
 0x427   : > { %v14378_v48 = vand.u32 4294901760, %v8052_v8  ;;  %v14383_v13 = vand.u32 4294901760, %v8504_v11 }
 0x429   : > { %v8132_v5 = vsub.f32 %v8052_v8, %v14378_v48  ;;  %v8584_v28 = vsub.f32 %v8504_v11, %v14383_v13 }
 0x42a   : > { %12444 = vmatmul.mubr.f32.vlgmr.msra.gmra.mrb[12].mxu0 %v14273_v31 }
 0x42b   : > { %12447 = vmatpush3.xpose.msra.mxu0 %v14289_v40  ;;  %12448 = vmatprep.mubr.msk.f32.mxu0 %vm13328_vm0, %v13329_v1  ;;  %v8133_v15 = vand.u32 4294901760, %v8132_v5  ;;  %v8585_v21 = vand.u32 4294901760, %v8584_v28 }
 0x42c   : > { %12474 = vmatmul.mubr.f32.vlgmr.msra.gmra.mrb[16].mxu1 %v14280_v32  ;;  %12451 = vmatprep.subr.mxu0 %v13329_v1 }
 0x42d   : > { %12477 = vmatpush3.xpose.msra.mxu1 %v14296_v35  ;;  %12478 = vmatprep.mubr.msk.f32.mxu1 %vm13328_vm0, %v13329_v1  ;;  %v8134_v43 = vsub.f32 %v8132_v5, %v8133_v15  ;;  %v8586_v41 = vsub.f32 %v8584_v28, %v8585_v21 }
 0x42e   : > { %12481 = vmatprep.subr.mxu1 %v13329_v1 }
 0x42f   : > { %v8135_v34 = vand.u32 4294901760, %v8134_v43  ;;  %v8587_v39 = vand.u32 4294901760, %v8586_v41 }
 0x432   : > { %12449 = vmatmul.mubr.f32.vlgmr.msra.gmra.mrb[12].mxu0 %v14286_v10 }
 0x433   : > { %12452 = vmatpush3.xpose.msra.mxu0 %v14278_v29  ;;  %12453 = vmatprep.mubr.msk.f32.mxu0 %vm13328_vm0, %v13329_v1 }
 0x434   : > { %12479 = vmatmul.mubr.f32.vlgmr.msra.gmra.mrb[16].mxu1 %v14292_v42  ;;  %12456 = vmatprep.subr.mxu0 %v13329_v1 }
 0x435   : > { %12482 = vmatpush3.xpose.msra.mxu1 %v14283_v37  ;;  %12483 = vmatprep.mubr.msk.f32.mxu1 %vm13328_vm0, %v13329_v1 }
 0x436   : > { %12486 = vmatprep.subr.mxu1 %v13329_v1 }
 0x43a   : > { %12454 = vmatmul.mubr.f32.vlgmr.msra.gmra.mrb[12].mxu0 %v7218_v46 }
 0x43b   : > { %12457 = vmatpush3.xpose.msra.mxu0 %v7229_v45  ;;  %12458 = vmatprep.mubr.msk.f32.mxu0 %vm13328_vm0, %v13329_v1 }
 0x43c   : > { %12484 = vmatmul.mubr.f32.vlgmr.msra.gmra.mrb[16].mxu1 %v7670_v4  ;;  %12461 = vmatprep.subr.mxu0 %v13329_v1 }
 0x43d   : > { %12487 = vmatpush3.xpose.msra.mxu1 %v7681_v36  ;;  %12488 = vmatprep.mubr.msk.f32.mxu1 %vm13328_vm0, %v13329_v1 }
 0x43e   : > { %12491 = vmatprep.subr.mxu1 %v13329_v1 }
 0x442   : > { %12459 = vmatmul.mubr.f32.vlgmr.msra.gmra.mrb[12].mxu0 %v14273_v31 }
 0x443   : > { %12462 = vmatpush3.xpose.msra.mxu0 %v14278_v29  ;;  %12463 = vmatprep.mubr.msk.f32.mxu0 %vm13328_vm0, %v13329_v1 }
 0x444   : > { %12489 = vmatmul.mubr.f32.vlgmr.msra.gmra.mrb[16].mxu1 %v14280_v32  ;;  %12496 = vmatprep.subr.mxu0 %v13329_v1 }
 0x445   : > { %12492 = vmatpush3.xpose.msra.mxu1 %v14283_v37  ;;  %12493 = vmatprep.mubr.msk.f32.mxu1 %vm13328_vm0, %v13329_v1 }
 0x446   : > { %12526 = vmatprep.subr.mxu1 %v13329_v1 }
 0x44a   : > { %12464 = vmatmul.mubr.f32.vlgmr.msra.gmra.mrb[12].mxu0 %v14273_v31 }
 0x44b   : > { %12497 = vmatpush3.xpose.msra.mxu0 %v14378_v48  ;;  %12498 = vmatprep.mubr.msk.f32.mxu0 %vm13328_vm0, %v13329_v1 }
 0x44c   : > { %12494 = vmatmul.mubr.f32.vlgmr.msra.gmra.mrb[16].mxu1 %v14280_v32  ;;  %12501 = vmatprep.subr.mxu0 %v13329_v1 }
 0x44d   : > { %12527 = vmatpush3.xpose.msra.mxu1 %v14383_v13  ;;  %12528 = vmatprep.mubr.msk.f32.mxu1 %vm13328_vm0, %v13329_v1 }
 0x44e   : > { %12499 = vmatmul.mubr.f32.vlgmr.msra.gmra.mrb[14].mxu0 %v8124_v33  ;;  %12531 = vmatprep.subr.mxu1 %v13329_v1 }
 0x44f   : > { %12502 = vmatpush3.xpose.msra.mxu0 %v8135_v34  ;;  %12503 = vmatprep.mubr.msk.f32.mxu0 %vm13328_vm0, %v13329_v1 }
 0x450   : > { %12529 = vmatmul.mubr.f32.vlgmr.msra.gmra.mrb[18].mxu1 %v8576_v38  ;;  %12506 = vmatprep.subr.mxu0 %v13329_v1 }
 0x451   : > { %12532 = vmatpush3.xpose.msra.mxu1 %v8587_v39  ;;  %12533 = vmatprep.mubr.msk.f32.mxu1 %vm13328_vm0, %v13329_v1 }
 0x452   : > { %12536 = vmatprep.subr.mxu1 %v13329_v1 }
 0x456   : > { %12504 = vmatmul.mubr.f32.vlgmr.msra.gmra.mrb[14].mxu0 %v14373_v3 }
 0x457   : > { %12507 = vmatpush3.xpose.msra.mxu0 %v8132_v5  ;;  %12508 = vmatprep.mubr.msk.f32.mxu0 %vm13328_vm0, %v13329_v1 }
 0x458   : > { %12534 = vmatmul.mubr.f32.vlgmr.msra.gmra.mrb[18].mxu1 %v14380_v12  ;;  %12511 = vmatprep.subr.mxu0 %v13329_v1 }
 0x459   : > { %12537 = vmatpush3.xpose.msra.mxu1 %v8584_v28  ;;  %12538 = vmatprep.mubr.msk.f32.mxu1 %vm13328_vm0, %v13329_v1 }
 0x45a   : > { %12541 = vmatprep.subr.mxu1 %v13329_v1 }
 0x45e   : > { %12509 = vmatmul.mubr.f32.vlgmr.msra.gmra.mrb[14].mxu0 %v8121_v2 }
 0x45f   : > { %12512 = vmatpush3.xpose.msra.mxu0 %v14378_v48  ;;  %12513 = vmatprep.mubr.msk.f32.mxu0 %vm13328_vm0, %v13329_v1 }
 0x460   : > { %12539 = vmatmul.mubr.f32.vlgmr.msra.gmra.mrb[18].mxu1 %v8573_v14  ;;  %12516 = vmatprep.subr.mxu0 %v13329_v1 }
 0x461   : > { %12542 = vmatpush3.xpose.msra.mxu1 %v14383_v13  ;;  %12543 = vmatprep.mubr.msk.f32.mxu1 %vm13328_vm0, %v13329_v1 }
 0x462   : > { %12546 = vmatprep.subr.mxu1 %v13329_v1 }
 0x466   : > { %12514 = vmatmul.mubr.f32.vlgmr.msra.gmra.mrb[14].mxu0 %v8122_v30 }
 0x467   : > { %12517 = vmatpush3.xpose.msra.mxu0 %v8133_v15  ;;  %12518 = vmatprep.mubr.msk.f32.mxu0 %vm13328_vm0, %v13329_v1 }
 0x468   : > { %12544 = vmatmul.mubr.f32.vlgmr.msra.gmra.mrb[18].mxu1 %v8574_v18  ;;  %12521 = vmatprep.subr.mxu0 %v13329_v1 }
 0x469   : > { %12547 = vmatpush3.xpose.msra.mxu1 %v8585_v21  ;;  %12548 = vmatprep.mubr.msk.f32.mxu1 %vm13328_vm0, %v13329_v1 }
 0x46a   : > { %12551 = vmatprep.subr.mxu1 %v13329_v1 }
 0x46d   : > { %v3908_v44 = vpop.f32.mrb[4].mxu0 }
 0x46e   : > { %v12225_v63 = vpop.f32.mrb[5].mxu0  ;;  %12519 = vmatmul.mubr.f32.vlgmr.msra.gmra.mrb[14].mxu0 %v14373_v3 }
 0x46f   : > { %v4360_v31 = vpop.f32.mrb[8].mxu1  ;;  %12522 = vmatpush3.xpose.msra.mxu0 %v14378_v48  ;;  %12523 = vmatprep.mubr.msk.f32.mxu0 %vm13328_vm0, %v13329_v1 }
 0x470   : > { %v12255_v29 = vpop.f32.mrb[9].mxu1  ;;  %12549 = vmatmul.mubr.f32.vlgmr.msra.gmra.mrb[18].mxu1 %v14380_v12  ;;  %12556 = vmatprep.subr.mxu0 %v13329_v1 }
 0x471   : > { %12552 = vmatpush3.xpose.msra.mxu1 %v14383_v13  ;;  %12553 = vmatprep.mubr.msk.f32.mxu1 %vm13328_vm0, %v13329_v1 }
 0x472   : > { %12586 = vmatprep.subr.mxu1 %v13329_v1 }
 0x476   : > { %12524 = vmatmul.mubr.f32.vlgmr.msra.gmra.mrb[14].mxu0 %v14373_v3  ;;  %v8952_v3 = vld [vmem:[%s421_s15] sm:$0xff]  ;;  %s13336_s15 = smov 64  }
 0x477   : > { %12558 = vmatprep.mubr.msk.f32.mxu0 %vm13328_vm0, %v13329_v1  ;;  %vm8953_vm12 = vcmp.ne.s32.totalorder %v8952_v3, 0 }
 0x478   : > { %12554 = vmatmul.mubr.f32.vlgmr.msra.gmra.mrb[18].mxu1 %v14380_v12 }
 0x479   : > { %12588 = vmatprep.mubr.msk.f32.mxu1 %vm13328_vm0, %v13329_v1 }
 0x499   : > { %v4812_v32 = vpop.f32.mrb[6].mxu0 }
 0x49a   : > { %v7076_v37 = vcombine.low %v3908_v44, %v4812_v32  ;;  %v12285_v10 = vpop.f32.mrb[7].mxu0 }
 0x49b   : > { %v5264_v40 = vpop.f32.mrb[10].mxu1 }
 0x49c   : > { %v7084_v42 = vcombine.low %v4360_v31, %v5264_v40  ;;  %v12315_v35 = vpop.f32.mrb[11].mxu1  ;;  %v7083_v46 = vrot.slane %v7076_v37, %v13680_v19 }
 0x49e   : > { %v7091_v45 = vrot.slane %v7084_v42, %v13680_v19 }
 0x4a0   : > { %v7108_v4 = vcombine.low %v7083_v46, %v7091_v45  ;;  %v7109_v36 = vcombine.high %v7083_v46, %v7091_v45 }
 0x4a2   : > { %v7116_v61 = vrot.slane %v7108_v4, %v13695_v25  ;;  %v7123_v49 = vrot.slane %v7109_v36, %v13695_v25 }
 0x4c5   : > { %v5716_v20 = vpop.f32.mrb[8].mxu0 }
 0x4c6   : > { %v12345_v6 = vpop.f32.mrb[9].mxu0 }
 0x4c7   : > { %v6168_v47 = vpop.f32.mrb[12].mxu1 }
 0x4c8   : > { %v12375_v50 = vpop.f32.mrb[13].mxu1 }
 0x4f1   : > { %v6620_v53 = vpop.f32.mrb[10].mxu0 }
 0x4f2   : > { %v7092_v54 = vcombine.low %v5716_v20, %v6620_v53  ;;  %v12405_v55 = vpop.f32.mrb[11].mxu0 }
 0x4f3   : > { %v7072_v24 = vpop.f32.mrb[14].mxu1 }
 0x4f4   : > { %v7100_v26 = vcombine.low %v6168_v47, %v7072_v24  ;;  %v12435_v56 = vpop.f32.mrb[15].mxu1  ;;  %v7099_v57 = vrot.slane %v7092_v54, %v13680_v19 }
 0x4f6   : > { %v7107_v58 = vrot.slane %v7100_v26, %v13680_v19 }
 0x4f8   : > { %v7124_v59 = vcombine.low %v7099_v57, %v7107_v58  ;;  %v7125_v60 = vcombine.high %v7099_v57, %v7107_v58 }
 0x4fa   : > { %v7132_v62 = vrot.slane %v7124_v59, %v13695_v25  ;;  %v7139_v7 = vrot.slane %v7125_v60, %v13695_v25 }
 0x4fc   : > { %v7140_v52 = vcombine.low %v7116_v61, %v7132_v62  ;;  %v7141_v8 = vcombine.high %v7116_v61, %v7132_v62  ;;  %v7142_v9 = vcombine.low %v7123_v49, %v7139_v7  ;;  %v7143_v11 = vcombine.high %v7123_v49, %v7139_v7 }
 0x51d   : > { %v7592_v48 = vpop.f32.mrb[12].mxu0 }
 0x51e   : > { %v12816_v12 = vadd.f32 %v7592_v48, %v7140_v52  ;;  %v12465_v13 = vpop.f32.mrb[13].mxu0 }
 0x51f   : > { %v8044_v2 = vpop.f32.mrb[16].mxu1 }
 0x520   : > { %v12817_v5 = vadd.f32 %v8044_v2, %v7141_v8  ;;  %v12495_v14 = vpop.f32.mrb[17].mxu1  ;;  %v8956_v28 = vsel %vm8953_vm12, -1e+18, %v12816_v12 }
 0x521   : > { %v8960_v30 = vsel %vm1499_vm2, %v8956_v28, -inf }
 0x522   : > { %v8957_v15 = vsel %vm8953_vm12, -1e+18, %v12817_v5  ;;  %8961 = vmax.xlane.f32.xlu1 %v8960_v30 }
 0x523   : > { %v8963_v18 = vsel %vm1499_vm2, %v8957_v15, -inf }
 0x524   : > { %8964 = vmax.xlane.f32.xlu0 %v8963_v18 }
 0x549   : > { %v8496_v21 = vpop.f32.mrb[14].mxu0 }
 0x54a   : > { %v12818_v23 = vadd.f32 %v8496_v21, %v7142_v9  ;;  %v12525_v43 = vpop.f32.mrb[15].mxu0 }
 0x54b   : > { %v8948_v27 = vpop.f32.mrb[18].mxu1 }
 0x54c   : > { %v12819_v41 = vadd.f32 %v8948_v27, %v7143_v11  ;;  %v12555_v33 = vpop.f32.mrb[19].mxu1  ;;  %v8958_v34 = vsel %vm8953_vm12, -1e+18, %v12818_v23 }
 0x54d   : > { %v8966_v38 = vsel %vm1499_vm2, %v8958_v34, -inf }
 0x54e   : > { %v8959_v39 = vsel %vm8953_vm12, -1e+18, %v12819_v41  ;;  %8967 = vmax.xlane.f32.xlu0 %v8966_v38 }
 0x54f   : > { %v8969_v44 = vsel %vm1499_vm2, %v8959_v39, -inf }
 0x550   : > { %8970 = vmax.xlane.f32.xlu1 %v8969_v44 }
 0x561   : > { %1285 = vrot.lane.b32.xlu1 %v13676_v17, %s13336_s15 }
 0x564   : > { %1283 = vrot.lane.b32.xlu0 %v13639_v51, %s13336_s15 }
 0x5af   : > { %v8962_v63 = vpop.xlane.xlu1 %8961 }
 0x5b0   : > { %v8972_v31 = vsub.f32 %v8956_v28, %v8962_v63 }
 0x5b1   : > { %v8965_v29 = vpop.xlane.xlu0 %8964 }
 0x5b2   : > { %v8973_v32 = vsub.f32 %v8957_v15, %v8965_v29  ;;  %v8976_v37 = vmul.f32 1.442695, %v8972_v31 }
 0x5b4   : > { %v8978_v10 = vmul.f32 1.442695, %v8973_v32  ;;  %13114 = vpow2.f32 %v8976_v37 }
 0x5b6   : > { %13116 = vpow2.f32 %v8978_v10 }
 0x5be   : > { %v13115_v40 = vpop.eup %13114 }
 0x5bf   : > { %v8984_v35 = vsel %vm1499_vm2, %v13115_v40, 0.0 }
 0x5c0   : > { %v13117_v42 = vpop.eup %13116  ;;  %8985 = vadd.xlane.f32.xlu0 %v8984_v35 }
 0x5c1   : > { %v8987_v46 = vsel %vm1499_vm2, %v13117_v42, 0.0 }
 0x5c2   : > { %8988 = vadd.xlane.f32.xlu1 %v8987_v46 }
 0x5d3   : > { %1287 = vrot.lane.b32.xlu1 %v13686_v22, %s13336_s15 }
 0x5d6   : > { %1289 = vrot.lane.b32.xlu0 %v13674_v16, %s13336_s15 }
 0x5db   : > { %v8968_v17 = vpop.xlane.xlu0 %8967 }
 0x5dc   : > { %v8974_v4 = vsub.f32 %v8958_v34, %v8968_v17 }
 0x5dd   : > { %v8971_v51 = vpop.xlane.xlu1 %8970 }
 0x5de   : > { %v8975_v45 = vsub.f32 %v8959_v39, %v8971_v51  ;;  %v8980_v20 = vmul.f32 1.442695, %v8974_v4 }
 0x5df   : > { %v1284_v22 = vpop.permute.xlu0 %1283 }
 0x5e0   : > { %v8982_v36 = vmul.f32 1.442695, %v8975_v45 }
 0x5e1   : > { %v1286_v53 = vpop.permute.xlu1 %1285 }
 0x5e2   : > { %13118 = vpow2.f32 %v8982_v36 }
 0x5e3   : > { %13120 = vpow2.f32 %v8980_v20 }
 0x5ec   : > { %v14477_v6 = vpop.eup %13118 }
 0x5ed   : > { %v14479_v47 = vpop.eup %13120  ;;  %v8993_v50 = vsel %vm1499_vm2, %v14477_v6, 0.0 }
 0x5ee   : > { %v8990_v16 = vsel %vm1499_vm2, %v14479_v47, 0.0 }
 0x5f5   : > { %8994 = vadd.xlane.f32.xlu0 %v8993_v50 }
 0x5f7   : > { %8991 = vadd.xlane.f32.xlu1 %v8990_v16 }
 0x64d   : > { %v8986_v54 = vpop.xlane.xlu0 %8985 }
 0x64e   : > { %13122 = vrcp.f32 %v8986_v54 }
 0x64f   : > { %v8989_v55 = vpop.xlane.xlu1 %8988 }
 0x650   : > { %13124 = vrcp.f32 %v8989_v55 }
 0x651   : > { %v1290_v24 = vpop.permute.xlu0 %1289 }
 0x652   : > { %v1311_v26 = vcombine.low %v1286_v53, %v1290_v24  ;;  %v1312_v56 = vcombine.high %v1286_v53, %v1290_v24 }
 0x653   : > { %v1288_v57 = vpop.permute.xlu1 %1287 }
 0x654   : > { %v1295_v58 = vcombine.low %v1284_v22, %v1288_v57  ;;  %v1296_v59 = vcombine.high %v1284_v22, %v1288_v57  ;;  %v1319_v60 = vrot.slane %v1311_v26, %v13680_v19  ;;  %v1326_v61 = vrot.slane %v1312_v56, %v13680_v19 }
 0x656   : > { %v1303_v62 = vrot.slane %v1295_v58, %v13680_v19  ;;  %v1310_v49 = vrot.slane %v1296_v59, %v13680_v19 }
 0x658   : > { %v1327_v7 = vcombine.low %v1303_v62, %v1319_v60  ;;  %v1328_v52 = vcombine.high %v1303_v62, %v1319_v60  ;;  %v1343_v8 = vcombine.low %v1310_v49, %v1326_v61  ;;  %v1344_v9 = vcombine.high %v1310_v49, %v1326_v61  ;;  %v13123_v11 = vpop.eup %13122 }
 0x659   : > { %v9000_v48 = vmul.f32 %v13123_v11, %v13115_v40 }
 0x65a   : > { %v13125_v3 = vpop.eup %13124  ;;  %v1335_v12 = vrot.slane %v1327_v7, %v13695_v25  ;;  %v1342_v13 = vrot.slane %v1328_v52, %v13695_v25  ;;  %v1351_v2 = vrot.slane %v1343_v8, %v13695_v25  ;;  %v1358_v14 = vrot.slane %v1344_v9, %v13695_v25 }
 0x65b   : > { %v9001_v5 = vmul.f32 %v13125_v3, %v13117_v42  ;;  %9004 = vst.msk [vmem:[%s14494_s12] sm:$0xff] %vm1499_vm2, %v9000_v48  ;;  %v9009_v15 = vsel %vm1499_vm2, %v9000_v48, 0 }
 0x65c   : > { %v1363_v28 = vcombine.low %v1335_v12, %v1342_v13  ;;  %v11657_v30 = vcombine.high %v1335_v12, %v1342_v13  ;;  %v1379_v18 = vcombine.low %v1351_v2, %v1358_v14  ;;  %v11658_v21 = vcombine.high %v1351_v2, %v1358_v14 }
 0x65d   : > { %9005 = vst.msk [vmem:[%s14494_s12 + $0x8] sm:$0xff] %vm1499_vm2, %v9001_v5  ;;  %v14501_v23 = vand.u32 4294901760, %v9009_v15  ;;  %v9458_v43 = vsel %vm1499_vm2, %v9001_v5, 0 }
 0x65e   : > { %v14505_v27 = vrot.slane %v1363_v28, %v13680_v19  ;;  %v14508_v41 = vrot.slane %v11657_v30, %v13680_v19  ;;  %v14510_v33 = vand.u32 4294901760, %v9458_v43  ;;  %v1386_v34 = vrot.slane %v1379_v18, %v13680_v19 }
 0x65f   : > { %v1394_v38 = vrot.slane %v11658_v21, %v13680_v19  ;;  %v9078_v39 = vsub.f32 %v9009_v15, %v14501_v23 }
 0x660   : > { %v1395_v44 = vcombine.low %v14505_v27, %v14508_v41  ;;  %v9527_v63 = vsub.f32 %v9458_v43, %v14510_v33  ;;  %v1396_v24 = vcombine.high %v14505_v27, %v14508_v41 }
 0x661   : > { %v1411_v31 = vcombine.low %v1386_v34, %v1394_v38  ;;  %v9079_v29 = vand.u32 4294901760, %v9078_v39  ;;  %v1412_v26 = vcombine.high %v1386_v34, %v1394_v38 }
 0x662   : > { %v1403_v32 = vrot.slane %v1395_v44, %v13695_v25  ;;  %v9528_v37 = vand.u32 4294901760, %v9527_v63  ;;  %v1410_v57 = vrot.slane %v1396_v24, %v13695_v25 }
 0x663   : > { %v1419_v10 = vrot.slane %v1411_v31, %v13695_v25  ;;  %v9080_v40 = vsub.f32 %v9078_v39, %v9079_v29  ;;  %v1426_v58 = vrot.slane %v1412_v26, %v13695_v25 }
 0x664   : > { %v9529_v42 = vsub.f32 %v9527_v63, %v9528_v37 }
 0x665   : > { %v1427_v35 = vcombine.low %v1403_v32, %v1419_v10  ;;  %v1428_v46 = vcombine.high %v1403_v32, %v1419_v10  ;;  %v9081_v4 = vand.u32 4294901760, %v9080_v40  ;;  %v1430_v60 = vcombine.high %v1410_v57, %v1426_v58 }
 0x666   : > { %v9530_v51 = vand.u32 4294901760, %v9529_v42  ;;  %v1429_v61 = vcombine.low %v1410_v57, %v1426_v58 }
 0x667   : > { %v9012_v17 = vand.u32 4294901760, %v1427_v35  ;;  %v9461_v45 = vand.u32 4294901760, %v1428_v46  ;;  %v14554_v62 = vand.u32 4294901760, %v1430_v60 }
 0x668   : > { %v14558_v49 = vand.u32 4294901760, %v1429_v61 }
 0x669   : > { %12557 = vmatpush3.msra.mxu0 %v9012_v17  ;;  %v9089_v36 = vsub.f32 %v1427_v35, %v9012_v17  ;;  %12587 = vmatpush3.msra.mxu1 %v9461_v45  ;;  %v9538_v20 = vsub.f32 %v1428_v46, %v9461_v45  ;;  %v10436_v9 = vsub.f32 %v1430_v60, %v14554_v62 }
 0x66a   : > { %12559 = vmatmul.mubr.f32.vlgmr.msra.gmra.mrb[16].mxu0 %v9081_v4  ;;  %12589 = vmatmul.mubr.f32.vlgmr.msra.gmra.mrb[20].mxu1 %v9530_v51  ;;  %v9987_v3 = vsub.f32 %v1429_v61, %v14558_v49 }
 0x66b   : > { %12561 = vmatprep.subr.mxu0 %v13329_v1  ;;  %12591 = vmatprep.subr.mxu1 %v13329_v1  ;;  %v9090_v50 = vand.u32 4294901760, %v9089_v36  ;;  %v9539_v16 = vand.u32 4294901760, %v9538_v20 }
 0x66c   : > { %12563 = vmatprep.mubr.msk.f32.mxu0 %vm13328_vm0, %v13329_v1  ;;  %12593 = vmatprep.mubr.msk.f32.mxu1 %vm13328_vm0, %v13329_v1  ;;  %v9988_v5 = vand.u32 4294901760, %v9987_v3 }
 0x66d   : > { %v9091_v22 = vsub.f32 %v9089_v36, %v9090_v50  ;;  %v9540_v53 = vsub.f32 %v9538_v20, %v9539_v16 }
 0x66e   : > { %v9989_v21 = vsub.f32 %v9987_v3, %v9988_v5 }
 0x66f   : > { %v9092_v54 = vand.u32 4294901760, %v9091_v22  ;;  %v9541_v55 = vand.u32 4294901760, %v9540_v53 }
 0x671   : > { %12562 = vmatpush3.msra.mxu0 %v9092_v54  ;;  %12592 = vmatpush3.msra.mxu1 %v9541_v55 }
 0x672   : > { %12564 = vmatmul.mubr.f32.vlgmr.msra.gmra.mrb[16].mxu0 %v14501_v23  ;;  %12566 = vmatprep.subr.mxu0 %v13329_v1 }
 0x673   : > { %12594 = vmatmul.mubr.f32.vlgmr.msra.gmra.mrb[20].mxu1 %v14510_v33  ;;  %12596 = vmatprep.subr.mxu1 %v13329_v1 }
 0x674   : > { %12567 = vmatpush3.msra.mxu0 %v9089_v36  ;;  %12597 = vmatpush3.msra.mxu1 %v9538_v20 }
 0x675   : > { %12568 = vmatprep.mubr.msk.f32.mxu0 %vm13328_vm0, %v13329_v1  ;;  %12571 = vmatprep.subr.mxu0 %v13329_v1 }
 0x676   : > { %12598 = vmatprep.mubr.msk.f32.mxu1 %vm13328_vm0, %v13329_v1  ;;  %12601 = vmatprep.subr.mxu1 %v13329_v1 }
 0x67a   : > { %12569 = vmatmul.mubr.f32.vlgmr.msra.gmra.mrb[16].mxu0 %v9078_v39 }
 0x67b   : > { %12572 = vmatpush3.msra.mxu0 %v9012_v17  ;;  %12599 = vmatmul.mubr.f32.vlgmr.msra.gmra.mrb[20].mxu1 %v9527_v63 }
 0x67c   : > { %12602 = vmatpush3.msra.mxu1 %v9461_v45  ;;  %12573 = vmatprep.mubr.msk.f32.mxu0 %vm13328_vm0, %v13329_v1 }
 0x67d   : > { %12576 = vmatprep.subr.mxu0 %v13329_v1  ;;  %12603 = vmatprep.mubr.msk.f32.mxu1 %vm13328_vm0, %v13329_v1 }
 0x67e   : > { %12606 = vmatprep.subr.mxu1 %v13329_v1 }
 0x682   : > { %12574 = vmatmul.mubr.f32.vlgmr.msra.gmra.mrb[16].mxu0 %v9079_v29  ;;  %v8995_v56 = vpop.xlane.xlu0 %8994 }
 0x683   : > { %12577 = vmatpush3.msra.mxu0 %v9090_v50  ;;  %12604 = vmatmul.mubr.f32.vlgmr.msra.gmra.mrb[20].mxu1 %v9528_v37  ;;  %13126 = vrcp.f32 %v8995_v56 }
 0x684   : > { %12607 = vmatpush3.msra.mxu1 %v9539_v16  ;;  %v8992_v59 = vpop.xlane.xlu1 %8991  ;;  %12578 = vmatprep.mubr.msk.f32.mxu0 %vm13328_vm0, %v13329_v1 }
 0x685   : > { %13128 = vrcp.f32 %v8992_v59  ;;  %12581 = vmatprep.subr.mxu0 %v13329_v1  ;;  %12608 = vmatprep.mubr.msk.f32.mxu1 %vm13328_vm0, %v13329_v1 }
 0x686   : > { %12611 = vmatprep.subr.mxu1 %v13329_v1 }
 0x68a   : > { %12579 = vmatmul.mubr.f32.vlgmr.msra.gmra.mrb[16].mxu0 %v14501_v23 }
 0x68b   : > { %12582 = vmatpush3.msra.mxu0 %v9012_v17  ;;  %12609 = vmatmul.mubr.f32.vlgmr.msra.gmra.mrb[20].mxu1 %v14510_v33 }
 0x68c   : > { %12612 = vmatpush3.msra.mxu1 %v9461_v45  ;;  %12583 = vmatprep.mubr.msk.f32.mxu0 %vm13328_vm0, %v13329_v1 }
 0x68d   : > { %12613 = vmatprep.mubr.msk.f32.mxu1 %vm13328_vm0, %v13329_v1  ;;  %12616 = vmatprep.subr.mxu0 %v13329_v1  ;;  %v13127_v7 = vpop.eup %13126 }
 0x68e   : > { %12646 = vmatprep.subr.mxu1 %v13329_v1  ;;  %v9003_v8 = vmul.f32 %v13127_v7, %v14477_v6  ;;  %v10437_v6 = vand.u32 4294901760, %v10436_v9 }
 0x68f   : > { %v13129_v52 = vpop.eup %13128 }
 0x690   : > { %v9002_v11 = vmul.f32 %v13129_v52, %v14479_v47  ;;  %9007 = vst.msk [vmem:[%s14494_s12 + $0x18] sm:$0xff] %vm1499_vm2, %v9003_v8  ;;  %v10356_v48 = vsel %vm1499_vm2, %v9003_v8, 0  ;;  %v10438_v30 = vsub.f32 %v10436_v9, %v10437_v6 }
 0x691   : > { %v10424_v12 = vand.u32 4294901760, %v10356_v48 }
 0x692   : > { %9006 = vst.msk [vmem:[%s14494_s12 + $0x10] sm:$0xff] %vm1499_vm2, %v9002_v11  ;;  %12584 = vmatmul.mubr.f32.vlgmr.msra.gmra.mrb[16].mxu0 %v14501_v23  ;;  %v9907_v13 = vsel %vm1499_vm2, %v9002_v11, 0  ;;  %v10439_v27 = vand.u32 4294901760, %v10438_v30  ;;  %v10957_v11 = vld [vmem:[%s14773_s5] sm:$0xff]  ;;  %s13226_s12 = scalar_lea.vmem %s13225_s19, 1024 }
 0x693   : > { %12614 = vmatmul.mubr.f32.vlgmr.msra.gmra.mrb[20].mxu1 %v14510_v33  ;;  %12617 = vmatpush3.msra.mxu0 %v14558_v49  ;;  %v9975_v2 = vand.u32 4294901760, %v9907_v13  ;;  %v10425_v47 = vsub.f32 %v10356_v48, %v10424_v12  ;;  %v9990_v33 = vand.u32 4294901760, %v9989_v21  ;;  %p13228_p12 = scmp.lt.s32.totalorder %s13226_s12, %s13220_s17 }
 0x694   : > { %12647 = vmatpush3.msra.mxu1 %v14554_v62  ;;  %12648 = vmatprep.mubr.msk.f32.mxu1 %vm13328_vm0, %v13329_v1 }
 0x695   : > { %12651 = vmatprep.subr.mxu1 %v13329_v1  ;;  %12618 = vmatprep.mubr.msk.f32.mxu0 %vm13328_vm0, %v13329_v1  ;;  %v9976_v14 = vsub.f32 %v9907_v13, %v9975_v2  ;;  %v10426_v28 = vand.u32 4294901760, %v10425_v47  ;;  %p13229_p0 = por %p13228_p12, %p13227_p6 }
 0x696   : > { %12621 = vmatprep.subr.mxu0 %v13329_v1 }
 0x697   : > { %v9977_v15 = vand.u32 4294901760, %v9976_v14  ;;  %v10427_v18 = vsub.f32 %v10425_v47, %v10426_v28  ;;  %p13230_p8 = pnand %p13229_p0, %p13223_p9 }
 0x699   : > { %v9978_v23 = vsub.f32 %v9976_v14, %v9977_v15  ;;  %v10428_v43 = vand.u32 4294901760, %v10427_v18 }
 0x69b   : > { %v9979_v41 = vand.u32 4294901760, %v9978_v23  ;;  %12649 = vmatmul.mubr.f32.vlgmr.msra.gmra.mrb[22].mxu1 %v10428_v43 }
 0x69c   : > { %12652 = vmatpush3.msra.mxu1 %v10439_v27  ;;  %12653 = vmatprep.mubr.msk.f32.mxu1 %vm13328_vm0, %v13329_v1 }
 0x69d   : > { %12619 = vmatmul.mubr.f32.vlgmr.msra.gmra.mrb[18].mxu0 %v9979_v41  ;;  %12656 = vmatprep.subr.mxu1 %v13329_v1 }
 0x69e   : > { %12622 = vmatpush3.msra.mxu0 %v9990_v33  ;;  %12623 = vmatprep.mubr.msk.f32.mxu0 %vm13328_vm0, %v13329_v1 }
 0x69f   : > { %12626 = vmatprep.subr.mxu0 %v13329_v1 }
 0x6a3   : > { %12654 = vmatmul.mubr.f32.vlgmr.msra.gmra.mrb[22].mxu1 %v10424_v12 }
 0x6a4   : > { %12657 = vmatpush3.msra.mxu1 %v10436_v9  ;;  %12658 = vmatprep.mubr.msk.f32.mxu1 %vm13328_vm0, %v13329_v1 }
 0x6a5   : > { %12624 = vmatmul.mubr.f32.vlgmr.msra.gmra.mrb[18].mxu0 %v9975_v2  ;;  %12661 = vmatprep.subr.mxu1 %v13329_v1 }
 0x6a6   : > { %12627 = vmatpush3.msra.mxu0 %v9987_v3  ;;  %12628 = vmatprep.mubr.msk.f32.mxu0 %vm13328_vm0, %v13329_v1  ;;  %v10959_v3 = vld [vmem:[%s14773_s5 + $0x10] sm:$0xff] }
 0x6a7   : > { %12631 = vmatprep.subr.mxu0 %v13329_v1 }
 0x6ab   : > { %12659 = vmatmul.mubr.f32.vlgmr.msra.gmra.mrb[22].mxu1 %v10425_v47 }
 0x6ac   : > { %12662 = vmatpush3.msra.mxu1 %v14554_v62  ;;  %12663 = vmatprep.mubr.msk.f32.mxu1 %vm13328_vm0, %v13329_v1 }
 0x6ad   : > { %12629 = vmatmul.mubr.f32.vlgmr.msra.gmra.mrb[18].mxu0 %v9976_v14  ;;  %12666 = vmatprep.subr.mxu1 %v13329_v1 }
 0x6ae   : > { %12632 = vmatpush3.msra.mxu0 %v14558_v49  ;;  %12633 = vmatprep.mubr.msk.f32.mxu0 %vm13328_vm0, %v13329_v1 }
 0x6af   : > { %12636 = vmatprep.subr.mxu0 %v13329_v1 }
 0x6b3   : > { %12664 = vmatmul.mubr.f32.vlgmr.msra.gmra.mrb[22].mxu1 %v10426_v28 }
 0x6b4   : > { %12667 = vmatpush3.msra.mxu1 %v10437_v6  ;;  %12668 = vmatprep.mubr.msk.f32.mxu1 %vm13328_vm0, %v13329_v1 }
 0x6b5   : > { %12634 = vmatmul.mubr.f32.vlgmr.msra.gmra.mrb[18].mxu0 %v9977_v15  ;;  %12671 = vmatprep.subr.mxu1 %v13329_v1 }
 0x6b6   : > { %12637 = vmatpush3.msra.mxu0 %v9988_v5  ;;  %12638 = vmatprep.mubr.msk.f32.mxu0 %vm13328_vm0, %v13329_v1  ;;  %v10978_v5 = vand.u32 4294901760, %v10959_v3 }
 0x6b7   : > { %12641 = vmatprep.subr.mxu0 %v13329_v1 }
 0x6b8   : > { %v11066_v18 = vsub.f32 %v10959_v3, %v10978_v5 }
 0x6bb   : > { %12669 = vmatmul.mubr.f32.vlgmr.msra.gmra.mrb[22].mxu1 %v10424_v12 }
 0x6bc   : > { %12672 = vmatpush3.msra.mxu1 %v14554_v62  ;;  %12673 = vmatprep.mubr.msk.f32.mxu1 %vm13328_vm0, %v13329_v1 }
 0x6bd   : > { %12639 = vmatmul.mubr.f32.vlgmr.msra.gmra.mrb[18].mxu0 %v9975_v2 }
 0x6be   : > { %12642 = vmatpush3.msra.mxu0 %v14558_v49  ;;  %12643 = vmatprep.mubr.msk.f32.mxu0 %vm13328_vm0, %v13329_v1 }
 0x6bf   : > { %12778 = vmatprep.subr.bf16.mxu0 %v13327_v0 }
 0x6c3   : > { %12674 = vmatmul.mubr.f32.vlgmr.msra.gmra.mrb[22].mxu1 %v10424_v12 }
 0x6c5   : > { %12644 = vmatmul.mubr.f32.vlgmr.msra.gmra.mrb[18].mxu0 %v9975_v2  ;;  %v10972_v2 = vand.u32 4294901760, %v10957_v11 }
 0x6c6   : > { %12684 = vmatprep.mubr.msk.f32.mxu0 %vm13328_vm0, %v13329_v1 }
 0x6c7   : > { %v11052_v30 = vsub.f32 %v10957_v11, %v10972_v2 }
 0x6c9   : > { %v11053_v43 = vand.u32 4294901760, %v11052_v30 }
 0x6cb   : > { %v11054_v41 = vsub.f32 %v11052_v30, %v11053_v43 }
 0x765   : > { %v9453_v34 = vpop.f32.mrb[16].mxu0 }
 0x766   : > { %v9902_v38 = vpop.f32.mrb[20].mxu1  ;;  %v12585_v39 = vpop.f32.mrb[17].mxu0 }
 0x767   : > { %v12615_v44 = vpop.f32.mrb[21].mxu1  ;;  %v11055_v39 = vand.u32 4294901760, %v11054_v41 }
 0x796   : > { %v10800_v63 = vpop.f32.mrb[22].mxu1 }
 0x797   : > { %v10820_v31 = vcombine.low %v9902_v38, %v10800_v63  ;;  %v10821_v29 = vcombine.high %v9902_v38, %v10800_v63  ;;  %v12675_v32 = vpop.f32.mrb[23].mxu1 }
 0x798   : > { %v10351_v37 = vpop.f32.mrb[18].mxu0 }
 0x799   : > { %v10804_v10 = vcombine.low %v9453_v34, %v10351_v37  ;;  %v10805_v40 = vcombine.high %v9453_v34, %v10351_v37  ;;  %v12645_v42 = vpop.f32.mrb[19].mxu0  ;;  %v10828_v35 = vrot.slane %v10820_v31, %v13680_v19  ;;  %v10835_v46 = vrot.slane %v10821_v29, %v13680_v19 }
 0x79a   : > { %v11067_v34 = vand.u32 4294901760, %v11066_v18 }
 0x79b   : > { %v10812_v51 = vrot.slane %v10804_v10, %v13680_v19  ;;  %v10819_v17 = vrot.slane %v10805_v40, %v13680_v19 }
 0x79c   : > { %v11068_v63 = vsub.f32 %v11066_v18, %v11067_v34 }
 0x79d   : > { %v10836_v45 = vcombine.low %v10812_v51, %v10828_v35  ;;  %v10837_v4 = vcombine.high %v10812_v51, %v10828_v35  ;;  %v10852_v36 = vcombine.low %v10819_v17, %v10835_v46  ;;  %v10853_v20 = vcombine.high %v10819_v17, %v10835_v46 }
 0x79e   : > { %v11069_v32 = vand.u32 4294901760, %v11068_v63 }
 0x79f   : > { %v10844_v50 = vrot.slane %v10836_v45, %v13695_v25  ;;  %v10851_v16 = vrot.slane %v10837_v4, %v13695_v25  ;;  %v10860_v22 = vrot.slane %v10852_v36, %v13695_v25  ;;  %v10867_v53 = vrot.slane %v10853_v20, %v13695_v25 }
 0x7a1   : > { %v10872_v54 = vcombine.low %v10844_v50, %v10851_v16  ;;  %v11699_v55 = vcombine.high %v10844_v50, %v10851_v16  ;;  %v10888_v24 = vcombine.low %v10860_v22, %v10867_v53  ;;  %v11700_v26 = vcombine.high %v10860_v22, %v10867_v53 }
 0x7a3   : > { %v10879_v56 = vrot.slane %v10872_v54, %v13680_v19  ;;  %v10887_v57 = vrot.slane %v11699_v55, %v13680_v19  ;;  %v10895_v58 = vrot.slane %v10888_v24, %v13680_v19  ;;  %v10903_v59 = vrot.slane %v11700_v26, %v13680_v19  ;;  %v10958_v19 = vld [vmem:[%s14773_s5 + $0x8] sm:$0xff] }
 0x7a4   : > { %v10975_v47 = vand.u32 4294901760, %v10958_v19 }
 0x7a5   : > { %v10905_v60 = vcombine.high %v10879_v56, %v10887_v57  ;;  %v10921_v61 = vcombine.high %v10895_v58, %v10903_v59  ;;  %v10904_v62 = vcombine.low %v10879_v56, %v10887_v57  ;;  %v10920_v49 = vcombine.low %v10895_v58, %v10903_v59 }
 0x7a6   : > { %v14648_v28 = vpack.c.bf16 %v10975_v47, %v10972_v2  ;;  %v11059_v15 = vsub.f32 %v10958_v19, %v10975_v47 }
 0x7a7   : > { %v10919_v7 = vrot.slane %v10905_v60, %v13695_v25  ;;  %v10935_v52 = vrot.slane %v10921_v61, %v13695_v25  ;;  %v10912_v8 = vrot.slane %v10904_v62, %v13695_v25  ;;  %v10928_v9 = vrot.slane %v10920_v49, %v13695_v25  ;;  %v10960_v25 = vld [vmem:[%s14773_s5 + $0x18] sm:$0xff] }
 0x7a8   : > { %v10981_v14 = vand.u32 4294901760, %v10960_v25  ;;  %12780 = vmatpush3.bf16.msra.mxu0 %v14648_v28  ;;  %v11060_v27 = vand.u32 4294901760, %v11059_v15  ;;  %v12791_v40 = vpack.c.bf16 %v11059_v15, %v11052_v30 }
 0x7a9   : > { %v10938_v48 = vcombine.low %v10919_v7, %v10935_v52  ;;  %v10937_v12 = vcombine.high %v10912_v8, %v10928_v9  ;;  %v10939_v13 = vcombine.high %v10919_v7, %v10935_v52  ;;  %v10936_v6 = vcombine.low %v10912_v8, %v10928_v9  ;;  %12781 = vmatprep.subr.bf16.mxu0 %v13327_v0 }
 0x7aa   : > { %v11073_v21 = vsub.f32 %v10960_v25, %v10981_v14  ;;  %v14651_v23 = vpack.c.bf16 %v10981_v14, %v10978_v5  ;;  %v11061_v33 = vsub.f32 %v11059_v15, %v11060_v27  ;;  %v12803_v35 = vpack.c.bf16 %v11060_v27, %v11053_v43 }
 0x7ab   : > { %10945 = vrot.lane.b32.xlu1 %v10938_v48, %s13337_s24  ;;  %10941 = vrot.lane.b32.xlu0 %v10937_v12, %s13338_s27 }
 0x7ac   : > { %v11074_v38 = vand.u32 4294901760, %v11073_v21  ;;  %12783 = vmatpush3.bf16.msra.mxu0 %v14651_v23  ;;  %v11062_v44 = vand.u32 4294901760, %v11061_v33  ;;  %v12794_v42 = vpack.c.bf16 %v11073_v21, %v11066_v18 }
 0x7ad   : > { %12784 = vmatprep.subr.bf16.mxu0 %v13327_v0 }
 0x7ae   : > { %v11075_v31 = vsub.f32 %v11073_v21, %v11074_v38  ;;  %v12785_v29 = vpack.c.bf16 %v11062_v44, %v11055_v39  ;;  %v12806_v46 = vpack.c.bf16 %v11074_v38, %v11067_v34 }
 0x7af   : > { %10949 = vrot.lane.b32.xlu1 %v10939_v13, %s13339_s16 }
 0x7b0   : > { %v11076_v37 = vand.u32 4294901760, %v11075_v31 }
 0x7b2   : > { %v12788_v10 = vpack.c.bf16 %v11076_v37, %v11069_v32 }
 0x81d   : > { %v10946_v51 = vpop.permute.xlu1 %10945  ;;  %v10942_v17 = vpop.permute.xlu0 %10941 }
 0x81e   : > { %v10952_v45 = vsel %vm1499_vm2, %v10936_v6, %v10942_v17 }
 0x81f   : > { %v10954_v36 = vsel %vm10953_vm13, %v10952_v45, %v10946_v51 }
 0x821   : > { %v10950_v4 = vpop.permute.xlu1 %10949 }
 0x822   : > { %v10956_v20 = vsel %vm10955_vm14, %v10954_v36, %v10950_v4 }
 0x823   : > { %v10969_v50 = vsel %vm496_vm1, %v10956_v20, 0 }
 0x824   : > { %v11040_v16 = vand.u32 4294901760, %v10969_v50 }
 0x826   : > { %v11041_v22 = vsub.f32 %v10969_v50, %v11040_v16 }
 0x828   : > { %v11042_v53 = vand.u32 4294901760, %v11041_v22 }
 0x82a   : > { %v11043_v54 = vsub.f32 %v11041_v22, %v11042_v53 }
 0x82c   : > { %v11044_v55 = vand.u32 4294901760, %v11043_v54 }
 0x82e   : > { %12685 = vmatmul.mubr.f32.vlgmr.msra.gmra.mrb[20].mxu0 %v11044_v55 }
 0x82f   : > { %12786 = vmatpush3.bf16.msra.mxu0 %v12785_v29  ;;  %12695 = vmatprep.mubr.msk.f32.mxu0 %vm13328_vm0, %v13329_v1 }
 0x830   : > { %12787 = vmatprep.subr.bf16.mxu0 %v13327_v0 }
 0x833   : > { %12789 = vmatpush3.bf16.msra.mxu0 %v12788_v10 }
 0x834   : > { %12790 = vmatprep.subr.bf16.mxu0 %v13327_v0 }
 0x836   : > { %12696 = vmatmul.mubr.f32.vlgmr.msra.gmra.mrb[20].mxu0 %v11040_v16 }
 0x837   : > { %12792 = vmatpush3.bf16.msra.mxu0 %v12791_v40  ;;  %12706 = vmatprep.mubr.msk.f32.mxu0 %vm13328_vm0, %v13329_v1 }
 0x838   : > { %12793 = vmatprep.subr.bf16.mxu0 %v13327_v0 }
 0x83b   : > { %12795 = vmatpush3.bf16.msra.mxu0 %v12794_v42 }
 0x83c   : > { %12796 = vmatprep.subr.bf16.mxu0 %v13327_v0 }
 0x83e   : > { %12707 = vmatmul.mubr.f32.vlgmr.msra.gmra.mrb[20].mxu0 %v11041_v22 }
 0x83f   : > { %12798 = vmatpush3.bf16.msra.mxu0 %v14648_v28  ;;  %12717 = vmatprep.mubr.msk.f32.mxu0 %vm13328_vm0, %v13329_v1 }
 0x840   : > { %12799 = vmatprep.subr.bf16.mxu0 %v13327_v0 }
 0x843   : > { %12801 = vmatpush3.bf16.msra.mxu0 %v14651_v23 }
 0x844   : > { %12802 = vmatprep.subr.bf16.mxu0 %v13327_v0 }
 0x846   : > { %12718 = vmatmul.mubr.f32.vlgmr.msra.gmra.mrb[20].mxu0 %v11042_v53 }
 0x847   : > { %12804 = vmatpush3.bf16.msra.mxu0 %v12803_v35  ;;  %12728 = vmatprep.mubr.msk.f32.mxu0 %vm13328_vm0, %v13329_v1 }
 0x848   : > { %12805 = vmatprep.subr.bf16.mxu0 %v13327_v0 }
 0x84b   : > { %12807 = vmatpush3.bf16.msra.mxu0 %v12806_v46 }
 0x84c   : > { %12808 = vmatprep.subr.bf16.mxu0 %v13327_v0 }
 0x84e   : > { %12729 = vmatmul.mubr.f32.vlgmr.msra.gmra.mrb[20].mxu0 %v11040_v16 }
 0x84f   : > { %12810 = vmatpush3.bf16.msra.mxu0 %v14648_v28  ;;  %12739 = vmatprep.mubr.msk.f32.mxu0 %vm13328_vm0, %v13329_v1 }
 0x850   : > { %12811 = vmatprep.subr.bf16.mxu0 %v13327_v0 }
 0x853   : > { %12813 = vmatpush3.bf16.msra.mxu0 %v14651_v23 }
 0x856   : > { %12740 = vmatmul.mubr.f32.vlgmr.msra.gmra.mrb[20].mxu0 %v11040_v16 }
 0x857   : > { %13233 = shalt.err (!%p13230_p8)
}
 0x858   : > { %s13234_s23 = scalar_lea.hbm %s14686_s26, 512  ;;  %s13238_s20 = scalar_lea.hbm %s14779_s11, 1024 }
 0x859   : > { %p13235_p13 = scmp.ne.s32.totalorder %s14686_s26, %s13234_s23  ;;  %p13239_p3 = scmp.lt.u32.totalorder %s14686_s26, %s14779_s11 }
 0x85a   : > { %p13240_p4 = scmp.lt.u32.totalorder %s13238_s20, %s13234_s23  ;;  %p13242_p10 = scmp.lt.u32.totalorder %s13234_s23, %s14686_s26 }
 0x85b   : > { %p13236_p11 = pnand %p13235_p13, %p14814_p5 }
 0x85c   : > { %p13241_p2 = por %p13240_p4, %p13239_p3 }
 0x85d   : > { %p13237_p1 = pneg %p13236_p11 }
 0x85e   : > { %p13243_p7 = por %p13242_p10, %p13241_p2 }
 0x860   : > { %p13244_p9 = pnand %p13243_p7, %p13237_p1 }
 0x862   : > { %13247 = shalt.err (!%p13244_p9)
}
 0x863   : > { %s13341_s10 = smov 128   ;;  %s14815_s17 = sld [smem:[#allocation22_spill]] }
 0x864   : > { %13046 = dma.vmem_to_hbm [thread:$0]  (%p14814_p5), %s14688_s25, 512, %s14686_s26, %s11463_s13, %s13341_s10, %s13341_s10, %s13338_s27  }
 0x865   : > { %s11704_s1 = sshll.u32 %s13424_s21, 7  ;;  %s476_s19 = scalar_lea.vmem [#allocation8], %s13574_s6 }
 0x866   : > { %s11476_s12 = sshll.u32 %s476_s19, 4  ;;  %s14816_s14 = sld [smem:[#allocation23_spill]]  ;;  %s14725_s12 = int_to_ptr.vmem [resolvable:$true] %s11476_s12 }
 0x867   : > { %s11458_s27 = scalar_lea.sflag [#allocation4], %s13571_s29  ;;  %s13248_s25 = scalar_lea.vmem %s14725_s12, 128 }
 0x868   : > { %p13249_p6 = scmp.ne.s32.totalorder %s14725_s12, %s13248_s25  ;;  %s13342_s21 = smov [#allocation8]  }
 0x869   : > { %v11701_v0 = vld [vmem:[%s14815_s17] ss:$0 sm:$0xff]  ;;  %s13252_s6 = sshll.u32 %s13342_s21, 4  ;;  %s13253_s6 = int_to_ptr.vmem [resolvable:$false] %s13252_s6 }
 0x86a   : > { %p13250_p12 = pnand %p13249_p6, %p14814_p5  ;;  %s13254_s26 = scalar_lea.vmem %s13253_s6, 256 }
 0x86b   : > { %p13255_p8 = scmp.lt.s32.totalorder %s14725_s12, %s13253_s6  ;;  %p13256_p13 = scmp.lt.s32.totalorder %s13254_s26, %s13248_s25 }
 0x86c   : > { %s14723_s20 = scalar_lea.hbm %s14816_s14, %s11704_s1  ;;  %p13251_p0 = pneg %p13250_p12 }
 0x86d   : > { %p13257_p11 = por %p13256_p13, %p13255_p8 }
 0x86f   : > { %p13258_p1 = pnand %p13257_p11, %p13251_p0 }
 0x929   : > { %v11452_v1 = vpop.f32.mrb[20].mxu0 }
 0x92a   : > { %v12820_v24 = vadd.f32 %v11701_v0, %v11452_v1  ;;  %v12741_v26 = vpop.f32.mrb[21].mxu0 }
 0x92c   : > { %11456 = vst.msk [vmem:[%s476_s19] sm:$0xff] %vm496_vm1, %v12820_v24 }
 0x92d   : > { %13261 = shalt.err (!%p13258_p1)
}
 0x92e   : > { %s13262_s29 = scalar_lea.hbm %s14723_s20, 128  ;;  %s13266_s16 = scalar_lea.hbm %s14816_s14, 256 }
 0x92f   : > { %p13263_p3 = scmp.ne.s32.totalorder %s14723_s20, %s13262_s29  ;;  %p13267_p10 = scmp.lt.u32.totalorder %s14723_s20, %s14816_s14 }
 0x930   : > { %p13268_p7 = scmp.lt.u32.totalorder %s13266_s16, %s13262_s29  ;;  %p13270_p6 = scmp.lt.u32.totalorder %s13262_s29, %s14723_s20 }
 0x931   : > { %p13264_p4 = pnand %p13263_p3, %p14814_p5 }
 0x932   : > { %p13269_p9 = por %p13268_p7, %p13267_p10 }
 0x933   : > { %p13265_p2 = pneg %p13264_p4 }
 0x934   : > { %p13271_p12 = por %p13270_p6, %p13269_p9 }
 0x936   : > { %p13272_p0 = pnand %p13271_p12, %p13265_p2 }
 0x938   : > { %13275 = shalt.err (!%p13272_p0)
}
 0x939   : > { %13045 = dma.vmem_to_hbm [thread:$0]  (%p14814_p5), %s14725_s12, 128, %s14723_s20, %s11458_s27  }
 0x93a PF: > { %s14817_s15 = sld [smem:[#allocation15_spill]]  ;;  %s14818_s17 = sld [smem:[#allocation20_spill]] }
 0x93b   : > { %s14819_s1 = sld [smem:[#allocation17_spill]] }
 0x940   : > { %s11504_s19 = sand.u32 1, %s14817_s15   ;;  %p14820_p8 = scmp.ne.s32.totalorder %s14818_s17, 0 }
 0x941   : > { %p14821_p13 = scmp.ge.s32.totalorder %s14819_s1, 2  ;;  %s11505_s23 = scalar_lea.sflag [#allocation4], %s11504_s19 }
 0x943   : > { %p13060_p11 = pnand %p14821_p13, %p14820_p8 }
 0x945   : > { %13301 = dma.done.wait (!%p13060_p11), %s11505_s23, 128  }
 0x946   : > { %13303 = vsyncadd (!%p13060_p11), %s11505_s23, 4294967168  ;;  %s11514_s30 = scalar_lea.sflag [#allocation10], %s11504_s19 }
 0x947   : > { %13305 = dma.done.wait (!%p13060_p11), %s11514_s30, 512  }
 0x948   : > { %13307 = vsyncadd (!%p13060_p11), %s11514_s30, 4294966784  ;;  %s14822_s20 = sld [smem:[#allocation18_spill]]  ;;  %s14823_s28 = sld [smem:[#allocation16_spill]] }
 0x949   : > { %s14824_s19 = sld [smem:[#allocation19_spill]]  ;;  %s14825_s17 = smov %s13314_s18 }
 0x94e   : > { %p31_p5 = scmp.ge.s32.totalorder %s14822_s20, 4   ;;  %s14826_s18 = smov %s14823_s28 }
 0x950   :  { %33 = sbr.rel (!%p31_p5) target bundleno = 13 (0xd), region = 146 }
 0x957   :  { %11519 = vsyncpa [#allocation3], 1 }
 0x958   :  { %11521 = vsyncpa [#allocation3 + $0x1], 1 }
 0x959   :  { %11522 = vsyncpa [#allocation6], 1 }
 0x95a   :  { %11524 = vsyncpa [#allocation6 + $0x1], 1 }
 0x95b   :  { %11525 = vsyncpa [#allocation4], 1 }
 0x95c   :  { %11527 = vsyncpa [#allocation4 + $0x1], 1 }
 0x95d   :  { %11528 = vsyncpa [#allocation10], 1 }
 0x95e   :  { %11530 = vsyncpa [#allocation10 + $0x1], 1 }

</bundles_post_ra>
